<compile_context>
chip_gen: v7x
topology: tpu7x:2x2x1
jax: 0.10.0
libtpu: 0.0.40
codegen_flags: <defaults>
</compile_context>

<pallas_src>
import jax
import jax.numpy as jnp
from jax.experimental import pallas as pl
from jax.experimental.pallas import tpu as pltpu


# ---------------------------------------------------------------------------
# Fused kernel: the entire Net7 forward in one body.  All refs are full VMEM
# blocks; intermediate activations live in vregs/VMEM only.
# ---------------------------------------------------------------------------

def _net7_fused_kernel(x_ref, w1_ref, w2_ref, w3_ref, w4_ref, vec_ref, o_ref):
    # Static (trace-time) layer widths and packed-vector offsets.  All offsets
    # are multiples of 128 so the slices are lane-aligned.
    n1 = w1_ref.shape[1]            # 2048
    n2 = w2_ref.shape[1]            # 512
    n3 = w3_ref.shape[1]            # 128
    n4 = w4_ref.shape[1]            # output_size
    o2 = 2 * n1                     # 4096
    o3 = o2 + 2 * n2                # 5120
    o4 = o3 + 2 * n3                # 5376

    s1 = vec_ref[:, 0:n1]
    t1 = vec_ref[:, n1:2 * n1]
    s2 = vec_ref[:, o2:o2 + n2]
    t2 = vec_ref[:, o2 + n2:o2 + 2 * n2]
    s3 = vec_ref[:, o3:o3 + n3]
    t3 = vec_ref[:, o3 + n3:o3 + 2 * n3]
    b4 = vec_ref[:, o4:o4 + n4]

    # layer 1: relu((x @ w1) * s1 + t1)     (Linear + folded eval-BN + ReLU)
    h = jnp.dot(x_ref[...].astype(jnp.bfloat16), w1_ref[...],
                preferred_element_type=jnp.float32)
    h = jnp.maximum(h * s1 + t1, 0.0)
    # layer 2
    h = jnp.dot(h.astype(jnp.bfloat16), w2_ref[...],
                preferred_element_type=jnp.float32)
    h = jnp.maximum(h * s2 + t2, 0.0)
    # layer 3
    h = jnp.dot(h.astype(jnp.bfloat16), w3_ref[...],
                preferred_element_type=jnp.float32)
    h = jnp.maximum(h * s3 + t3, 0.0)
    # output layer: output(relu(h)) — h is already >= 0, so relu is dropped.
    out = jnp.dot(h.astype(jnp.bfloat16), w4_ref[...],
                  preferred_element_type=jnp.float32)
    # Note: (B, output_size) with output_size < 128 lowers to masked stores;
    # keep output_size a multiple of 128 if this ever scales up.
    o_ref[...] = (out + b4).astype(o_ref.dtype)


def _net7_fused_call(x, w1, w2, w3, w4, packed_vec):
    B, D_in = x.shape
    n1, n2, n3 = w1.shape[1], w2.shape[1], w3.shape[1]
    n_out = w4.shape[1]

    flops = 2 * B * (D_in * n1 + n1 * n2 + n2 * n3 + n3 * n_out)
    bytes_accessed = (
        (w1.size + w2.size + w3.size + w4.size) * 2   # bf16 weights
        + packed_vec.size * 4                          # f32 affine vectors
        + x.size * 4 + B * n_out * 4)                  # f32 activations I/O

    return pl.pallas_call(
        _net7_fused_kernel,
        out_shape=jax.ShapeDtypeStruct((B, n_out), jnp.float32),
        compiler_params=pltpu.CompilerParams(
            vmem_limit_bytes=16 * 1024 * 1024),
        cost_estimate=pl.CostEstimate(
            flops=flops, transcendentals=0, bytes_accessed=bytes_accessed),
    )(x, w1, w2, w3, w4, packed_vec)


# ---------------------------------------------------------------------------
# Parameter construction (deterministic, synthetic)
# ---------------------------------------------------------------------------

def make_linear_params(key, fan_in, fan_out):
    kw, kb = jax.random.split(key)
    bound = 1.0 / jnp.sqrt(fan_in)
    w = jax.random.uniform(kw, (fan_in, fan_out), jnp.float32, -bound, bound)
    b = jax.random.uniform(kb, (fan_out,), jnp.float32, -bound, bound)
    return w, b


def make_bn_params(key, num_features, eps=1e-5):
    kg, kb, km, kv = jax.random.split(key, 4)
    gamma = 1.0 + 0.1 * jax.random.normal(kg, (num_features,), jnp.float32)
    beta = 0.1 * jax.random.normal(kb, (num_features,), jnp.float32)
    running_mean = 0.1 * jax.random.normal(km, (num_features,), jnp.float32)
    running_var = 1.0 + 0.1 * jax.random.uniform(kv, (num_features,),
                                                 jnp.float32)
    return gamma, beta, running_mean, running_var, eps


def fold_bn(bias, gamma, beta, mean, var, eps):
    """Fold Linear bias + eval-mode BatchNorm1d into (scale, shift), as (1,N)."""
    scale = gamma / jnp.sqrt(var + eps)
    shift = (bias - mean) * scale + beta
    n = scale.shape[0]
    return scale.reshape(1, n), shift.reshape(1, n)


def net7_init(input_size, output_size, seed=0):
    keys = jax.random.split(jax.random.PRNGKey(seed), 7)
    w1, b1 = make_linear_params(keys[0], input_size, 2048)
    bn1 = make_bn_params(keys[1], 2048)
    w2, b2 = make_linear_params(keys[2], 2048, 512)
    bn2 = make_bn_params(keys[3], 512)
    w3, b3 = make_linear_params(keys[4], 512, 128)
    bn3 = make_bn_params(keys[5], 128)
    w4, b4 = make_linear_params(keys[6], 128, output_size)

    s1, t1 = fold_bn(b1, *bn1)
    s2, t2 = fold_bn(b2, *bn2)
    s3, t3 = fold_bn(b3, *bn3)

    # Pack all per-feature f32 vectors into one lane-aligned buffer:
    # [s1 | t1 | s2 | t2 | s3 | t3 | b4]  (offsets 0,2048,4096,4608,5120,5248,5376)
    packed_vec = jnp.concatenate(
        [s1, t1, s2, t2, s3, t3, b4.reshape(1, output_size)], axis=1)

    return dict(
        w1=w1.astype(jnp.bfloat16), w2=w2.astype(jnp.bfloat16),
        w3=w3.astype(jnp.bfloat16), w4=w4.astype(jnp.bfloat16),
        vec=packed_vec,
        # f32-side copies of the folded affines for the pure-JAX reference.
        s1=s1, t1=t1, s2=s2, t2=t2, s3=s3, t3=t3,
        b4=b4.reshape(1, output_size))


# ---------------------------------------------------------------------------
# Forward passes
# ---------------------------------------------------------------------------

@jax.jit
def net7_forward(params, x):
    # Dropout layers are identity in eval mode; BN folded into (scale, shift).
    return _net7_fused_call(
        x, params["w1"], params["w2"], params["w3"], params["w4"],
        params["vec"])


def net7_forward_ref(params, x):
    """Pure-JAX reference mirroring the kernel's bf16 weights / f32 accumulate."""
    def mm(a, w):
        return jnp.dot(a.astype(jnp.bfloat16), w,
                       preferred_element_type=jnp.float32)
    h = jnp.maximum(mm(x, params["w1"]) * params["s1"] + params["t1"], 0.0)
    h = jnp.maximum(mm(h, params["w2"]) * params["s2"] + params["t2"], 0.0)
    h = jnp.maximum(mm(h, params["w3"]) * params["s3"] + params["t3"], 0.0)
    return mm(h, params["w4"]) + params["b4"]


# ---------------------------------------------------------------------------

if __name__ == "__main__":
    input_size = 32
    output_size = 16
    batch = 8

    params = net7_init(input_size, output_size, seed=0)
    x = jax.random.normal(jax.random.PRNGKey(0), (batch, input_size),
                          jnp.float32)

    out = net7_forward(params, x)
    out = jax.block_until_ready(out)

    ref = net7_forward_ref(params, x)
    assert out.shape == (batch, output_size)
    assert jnp.allclose(out, ref, atol=2e-3, rtol=2e-3), "mismatch vs reference"

    print("KERNEL_OK")
</pallas_src>

<mosaic_0001>
module attributes {stable_mosaic.version = 11 : i64} {
  func.func @_net7_fused_kernel(%arg0: memref<8x32xf32, #tpu.memory_space<vmem>>, %arg1: memref<32x2048xbf16, #tpu.memory_space<vmem>>, %arg2: memref<2048x512xbf16, #tpu.memory_space<vmem>>, %arg3: memref<512x128xbf16, #tpu.memory_space<vmem>>, %arg4: memref<128x16xbf16, #tpu.memory_space<vmem>>, %arg5: memref<1x5392xf32, #tpu.memory_space<vmem>>, %arg6: memref<8x16xf32, #tpu.memory_space<vmem>>) attributes {dimension_semantics = [], scalar_prefetch = 0 : i64, scratch_operands = 0 : i64, tpu.core_type = #tpu.core_type<tc>} {
    %c0 = arith.constant 0 : index
    %c0_0 = arith.constant 0 : index
    %0 = vector.load %arg5[%c0, %c0_0] : memref<1x5392xf32, #tpu.memory_space<vmem>>, vector<1x2048xf32>
    %c0_1 = arith.constant 0 : index
    %c2048 = arith.constant 2048 : index
    %1 = vector.load %arg5[%c0_1, %c2048] : memref<1x5392xf32, #tpu.memory_space<vmem>>, vector<1x2048xf32>
    %c0_2 = arith.constant 0 : index
    %c4096 = arith.constant 4096 : index
    %2 = vector.load %arg5[%c0_2, %c4096] : memref<1x5392xf32, #tpu.memory_space<vmem>>, vector<1x512xf32>
    %c0_3 = arith.constant 0 : index
    %c4608 = arith.constant 4608 : index
    %3 = vector.load %arg5[%c0_3, %c4608] : memref<1x5392xf32, #tpu.memory_space<vmem>>, vector<1x512xf32>
    %c0_4 = arith.constant 0 : index
    %c5120 = arith.constant 5120 : index
    %4 = vector.load %arg5[%c0_4, %c5120] : memref<1x5392xf32, #tpu.memory_space<vmem>>, vector<1x128xf32>
    %c0_5 = arith.constant 0 : index
    %c5248 = arith.constant 5248 : index
    %5 = vector.load %arg5[%c0_5, %c5248] : memref<1x5392xf32, #tpu.memory_space<vmem>>, vector<1x128xf32>
    %c0_6 = arith.constant 0 : index
    %c5376 = arith.constant 5376 : index
    %6 = vector.load %arg5[%c0_6, %c5376] : memref<1x5392xf32, #tpu.memory_space<vmem>>, vector<1x16xf32>
    %c0_7 = arith.constant 0 : index
    %c0_8 = arith.constant 0 : index
    %7 = vector.load %arg0[%c0_7, %c0_8] : memref<8x32xf32, #tpu.memory_space<vmem>>, vector<8x32xf32>
    %8 = arith.truncf %7 : vector<8x32xf32> to vector<8x32xbf16>
    %c0_9 = arith.constant 0 : index
    %c0_10 = arith.constant 0 : index
    %9 = vector.load %arg1[%c0_9, %c0_10] : memref<32x2048xbf16, #tpu.memory_space<vmem>>, vector<32x2048xbf16>
    %cst = arith.constant dense<0.000000e+00> : vector<8x2048xf32>
    %10 = tpu.matmul %8, %9, %cst {dimension_numbers = #tpu.dot_dimension_numbers<[1], [0], [0], [1], [0, 0, 1, 1], [], []>} : vector<8x32xbf16>, vector<32x2048xbf16>, vector<8x2048xf32> -> vector<8x2048xf32>
    %11 = vector.broadcast %0 : vector<1x2048xf32> to vector<8x2048xf32>
    %12 = arith.mulf %10, %11 : vector<8x2048xf32>
    %13 = vector.broadcast %1 : vector<1x2048xf32> to vector<8x2048xf32>
    %14 = arith.addf %12, %13 : vector<8x2048xf32>
    %cst_11 = arith.constant 0.000000e+00 : f32
    %15 = vector.broadcast %cst_11 : f32 to vector<8x2048xf32>
    %16 = arith.maximumf %14, %15 : vector<8x2048xf32>
    %17 = arith.truncf %16 : vector<8x2048xf32> to vector<8x2048xbf16>
    %c0_12 = arith.constant 0 : index
    %c0_13 = arith.constant 0 : index
    %18 = vector.load %arg2[%c0_12, %c0_13] : memref<2048x512xbf16, #tpu.memory_space<vmem>>, vector<2048x512xbf16>
    %cst_14 = arith.constant dense<0.000000e+00> : vector<8x512xf32>
    %19 = tpu.matmul %17, %18, %cst_14 {dimension_numbers = #tpu.dot_dimension_numbers<[1], [0], [0], [1], [0, 0, 1, 1], [], []>} : vector<8x2048xbf16>, vector<2048x512xbf16>, vector<8x512xf32> -> vector<8x512xf32>
    %20 = vector.broadcast %2 : vector<1x512xf32> to vector<8x512xf32>
    %21 = arith.mulf %19, %20 : vector<8x512xf32>
    %22 = vector.broadcast %3 : vector<1x512xf32> to vector<8x512xf32>
    %23 = arith.addf %21, %22 : vector<8x512xf32>
    %cst_15 = arith.constant 0.000000e+00 : f32
    %24 = vector.broadcast %cst_15 : f32 to vector<8x512xf32>
    %25 = arith.maximumf %23, %24 : vector<8x512xf32>
    %26 = arith.truncf %25 : vector<8x512xf32> to vector<8x512xbf16>
    %c0_16 = arith.constant 0 : index
    %c0_17 = arith.constant 0 : index
    %27 = vector.load %arg3[%c0_16, %c0_17] : memref<512x128xbf16, #tpu.memory_space<vmem>>, vector<512x128xbf16>
    %cst_18 = arith.constant dense<0.000000e+00> : vector<8x128xf32>
    %28 = tpu.matmul %26, %27, %cst_18 {dimension_numbers = #tpu.dot_dimension_numbers<[1], [0], [0], [1], [0, 0, 1, 1], [], []>} : vector<8x512xbf16>, vector<512x128xbf16>, vector<8x128xf32> -> vector<8x128xf32>
    %29 = vector.broadcast %4 : vector<1x128xf32> to vector<8x128xf32>
    %30 = arith.mulf %28, %29 : vector<8x128xf32>
    %31 = vector.broadcast %5 : vector<1x128xf32> to vector<8x128xf32>
    %32 = arith.addf %30, %31 : vector<8x128xf32>
    %cst_19 = arith.constant 0.000000e+00 : f32
    %33 = vector.broadcast %cst_19 : f32 to vector<8x128xf32>
    %34 = arith.maximumf %32, %33 : vector<8x128xf32>
    %35 = arith.truncf %34 : vector<8x128xf32> to vector<8x128xbf16>
    %c0_20 = arith.constant 0 : index
    %c0_21 = arith.constant 0 : index
    %36 = vector.load %arg4[%c0_20, %c0_21] : memref<128x16xbf16, #tpu.memory_space<vmem>>, vector<128x16xbf16>
    %cst_22 = arith.constant dense<0.000000e+00> : vector<8x16xf32>
    %37 = tpu.matmul %35, %36, %cst_22 {dimension_numbers = #tpu.dot_dimension_numbers<[1], [0], [0], [1], [0, 0, 1, 1], [], []>} : vector<8x128xbf16>, vector<128x16xbf16>, vector<8x16xf32> -> vector<8x16xf32>
    %38 = vector.broadcast %6 : vector<1x16xf32> to vector<8x16xf32>
    %39 = arith.addf %37, %38 : vector<8x16xf32>
    %c0_23 = arith.constant 0 : index
    %c0_24 = arith.constant 0 : index
    %40 = vector.load %arg6[%c0_23, %c0_24] : memref<8x16xf32, #tpu.memory_space<vmem>>, vector<8x16xf32>
    tpu.vector_store %arg6[%c0_23, %c0_24], %39 {strides = array<i32>} : memref<8x16xf32, #tpu.memory_space<vmem>>, vector<8x16xf32>,
    return
  }
}

</mosaic_0001>

<bundles_post_ra>
// kernel: net7_forward.1
= control target key start
LH: loop header
LB: loop body
LE: loop exit
PB: predicated region body
PF: predicated region fallthrough
CT: control target
= control target key end

     0   :  { %11 = vsyncpa [#allocation3], 0  ;;  %s7133_s0 = inlined_call_operand.hbm [shape: f32[8,32], index: 0, kind: input, shape index: {}]   ;;  %s7134_s1 = inlined_call_operand.hbm [shape: bf16[32,2048], index: 1, kind: input, shape index: {}]   ;;  %s7135_s2 = inlined_call_operand.hbm [shape: bf16[2048,512], index: 2, kind: input, shape index: {}]   ;;  %s7136_s3 = inlined_call_operand.hbm [shape: bf16[512,128], index: 3, kind: input, shape index: {}]   ;;  %s7137_s4 = inlined_call_operand.vmem [shape: bf16[128,16], index: 4, kind: input, shape index: {}]   ;;  %s7138_s5 = inlined_call_operand.hbm [shape: f32[1,5392], index: 5, kind: input, shape index: {}]   ;;  %s7139_s6 = inlined_call_operand.hbm [shape: f32[8,16], index: 6, kind: output, shape index: {}]  }
   0x1   :  { %12 = vsyncpa [#allocation6], 0 }
   0x2   :  { %13 = vsyncpa [#allocation9], 0 }
   0x3   :  { %14 = vsyncpa [#allocation4], 0  ;;  %s6809_s21 = smov [#allocation5]   ;;  %s6669_s25 = scalar_lea.hbm %s7134_s1, 4096 }
   0x4   :  { %s30_s22 = sshll.u32 %s6809_s21, 4  ;;  %p6670_p0 = scmp.ne.s32.totalorder %s7134_s1, %s6669_s25  ;;  %s31_s22 = int_to_ptr.vmem [resolvable:$true] %s30_s22 }
   0x5   :  { %p6673_p1 = scmp.lt.u32.totalorder %s6669_s25, %s7134_s1 }
   0x7   :  { %p6675_p2 = pnand %p6673_p1, %p6670_p0 }
   0x9   :  { %6678 = shalt.err (!%p6675_p2)
}
   0xa   :  { %s6679_s30 = scalar_lea.vmem %s31_s22, 4096  ;;  %p6684_p4 = scmp.lt.s32.totalorder %s31_s22, %s31_s22 }
   0xb   :  { %p6680_p3 = scmp.ne.s32.totalorder %s31_s22, %s6679_s30  ;;  %p6685_p5 = scmp.lt.s32.totalorder %s6679_s30, %s6679_s30 }
   0xd   :  { %p6686_p6 = por %p6685_p5, %p6684_p4 }
   0xf   :  { %p6687_p7 = pnand %p6686_p6, %p6680_p3 }
  0x11   :  { %6690 = shalt.err (!%p6687_p7)
}
  0x12   :  { %s6810_s7 = smov 1024   ;;  %s6811_s8 = smov 64  }
  0x13   :  { %36 = dma.hbm_to_vmem [thread:$0]  %s7134_s1, 4096, %s31_s22, [#allocation6], %s6810_s7, %s6810_s7, %s6811_s8  }
  0x14   :  { %s6812_s11 = smov [#allocation8]   ;;  %s6691_s15 = scalar_lea.hbm %s7136_s3, 4096 }
  0x15   :  { %s54_s12 = sshll.u32 %s6812_s11, 4  ;;  %p6692_p8 = scmp.ne.s32.totalorder %s7136_s3, %s6691_s15  ;;  %s55_s12 = int_to_ptr.vmem [resolvable:$true] %s54_s12 }
  0x16   :  { %p6695_p9 = scmp.lt.u32.totalorder %s6691_s15, %s7136_s3 }
  0x18   :  { %p6697_p10 = pnand %p6695_p9, %p6692_p8 }
  0x1a   :  { %6700 = shalt.err (!%p6697_p10)
}
  0x1b   :  { %s6701_s20 = scalar_lea.vmem %s55_s12, 4096  ;;  %p6706_p12 = scmp.lt.s32.totalorder %s55_s12, %s55_s12 }
  0x1c   :  { %p6702_p11 = scmp.ne.s32.totalorder %s55_s12, %s6701_s20  ;;  %p6707_p13 = scmp.lt.s32.totalorder %s6701_s20, %s6701_s20 }
  0x1e   :  { %p6708_p0 = por %p6707_p13, %p6706_p12 }
  0x20   :  { %p6709_p1 = pnand %p6708_p0, %p6702_p11 }
  0x22   :  { %6712 = shalt.err (!%p6709_p1)
}
  0x23   :  { %s6813_s1 = smov 4   ;;  %s6814_s23 = smov [#allocation2]  }
  0x24   :  { %60 = dma.hbm_to_vmem [thread:$0]  %s7136_s3, 4096, %s55_s12, [#allocation9], %s6811_s8, %s6811_s8, %s6813_s1  }
  0x25   :  { %s21_s24 = sshll.u32 %s6814_s23, 4  ;;  %s6815_s25 = smov [#allocation7]   ;;  %s22_s24 = int_to_ptr.vmem [resolvable:$true] %s21_s24 }
  0x26   :  { %s42_s26 = sshll.u32 %s6815_s25, 4  ;;  %s6713_s29 = scalar_lea.hbm %s7133_s0, 128  ;;  %s43_s26 = int_to_ptr.vmem [resolvable:$true] %s42_s26 }
  0x27   :  { %p6714_p2 = scmp.ne.s32.totalorder %s7133_s0, %s6713_s29  ;;  %p6717_p3 = scmp.lt.u32.totalorder %s6713_s29, %s7133_s0 }
  0x29   :  { %p6719_p4 = pnand %p6717_p3, %p6714_p2 }
  0x2b   :  { %6722 = shalt.err (!%p6719_p4)
}
  0x2c   :  { %s6723_s3 = scalar_lea.vmem %s22_s24, 128  ;;  %p6728_p6 = scmp.lt.s32.totalorder %s22_s24, %s22_s24 }
  0x2d   :  { %p6724_p5 = scmp.ne.s32.totalorder %s22_s24, %s6723_s3  ;;  %p6729_p7 = scmp.lt.s32.totalorder %s6723_s3, %s6723_s3 }
  0x2f   :  { %p6730_p8 = por %p6729_p7, %p6728_p6 }
  0x31   :  { %p6731_p9 = pnand %p6730_p8, %p6724_p5 }
  0x33   :  { %6734 = shalt.err (!%p6731_p9)
}
  0x34   :  { %24 = dma.hbm_to_vmem [thread:$0]  %s7133_s0, 128, %s22_s24, [#allocation3]  }
  0x35   :  { %s6735_s14 = scalar_lea.hbm %s7135_s2, 65536 }
  0x36   :  { %p6736_p10 = scmp.ne.s32.totalorder %s7135_s2, %s6735_s14  ;;  %p6739_p11 = scmp.lt.u32.totalorder %s6735_s14, %s7135_s2 }
  0x38   :  { %p6741_p12 = pnand %p6739_p11, %p6736_p10 }
  0x3a   :  { %6744 = shalt.err (!%p6741_p12)
}
  0x3b   :  { %s6745_s19 = scalar_lea.vmem %s43_s26, 65536  ;;  %p6750_p0 = scmp.lt.s32.totalorder %s43_s26, %s43_s26 }
  0x3c   :  { %p6746_p13 = scmp.ne.s32.totalorder %s43_s26, %s6745_s19  ;;  %p6751_p1 = scmp.lt.s32.totalorder %s6745_s19, %s6745_s19 }
  0x3e   :  { %p6752_p2 = por %p6751_p1, %p6750_p0 }
  0x40   :  { %p6753_p3 = pnand %p6752_p2, %p6746_p13 }
  0x42   :  { %6756 = shalt.err (!%p6753_p3)
}
  0x43   :  { %s6816_s0 = smov 256   ;;  %s6817_s20 = smov 16  }
  0x44   :  { %48 = dma.hbm_to_vmem [thread:$0]  %s7135_s2, 65536, %s43_s26, [#allocation6], %s6816_s0, %s6816_s0, %s6817_s20  }
  0x45   :  { %s6818_s22 = smov [#allocation10]   ;;  %s6757_s27 = scalar_lea.hbm %s7138_s5, 688 }
  0x46   :  { %s69_s23 = sshll.u32 %s6818_s22, 4  ;;  %p6758_p4 = scmp.ne.s32.totalorder %s7138_s5, %s6757_s27  ;;  %s70_s23 = int_to_ptr.vmem [resolvable:$true] %s69_s23 }
  0x47   :  { %p6761_p5 = scmp.lt.u32.totalorder %s6757_s27, %s7138_s5 }
  0x49   :  { %p6763_p6 = pnand %p6761_p5, %p6758_p4 }
  0x4b   :  { %6766 = shalt.err (!%p6763_p6)
}
  0x4c   :  { %s6767_s9 = scalar_lea.vmem %s70_s23, 688  ;;  %s6771_s2 = scalar_lea.vmem %s70_s23, 704 }
  0x4d   :  { %p6768_p7 = scmp.ne.s32.totalorder %s70_s23, %s6767_s9  ;;  %p6772_p8 = scmp.lt.s32.totalorder %s70_s23, %s70_s23 }
  0x4e   :  { %p6773_p9 = scmp.lt.s32.totalorder %s6771_s2, %s6767_s9 }
  0x50   :  { %p6774_p10 = por %p6773_p9, %p6772_p8 }
  0x52   :  { %p6775_p11 = pnand %p6774_p10, %p6768_p7 }
  0x54   :  { %6778 = shalt.err (!%p6775_p11)
}
  0x55   :  { %72 = dma.hbm_to_vmem [thread:$0]  %s7138_s5, 688, %s70_s23, [#allocation9]  }
  0x56   :  { %6801 = dma.done.wait [#allocation3], 128  }
  0x57   :  { %6802 = vsyncadd [#allocation3], 4294967168 }
  0x58   :  { %6803 = dma.done.wait [#allocation6], 69632  }
  0x59   :  { %6804 = vsyncadd [#allocation6], 4294897664 }
  0x5a   :  { %6805 = dma.done.wait [#allocation9], 4784  }
  0x5b   :  { %6806 = vsyncadd [#allocation9], 4294962512  ;;  %v6819_v0 = vmov 0   ;;  %v100_v1 = vld [vmem:[#allocation5] sm:$0xff]  ;;  %v101_v8 = vld [vmem:[#allocation5 + $0x8] sm:$0xff]  ;;  %vm292_vm0 = vcmask 261120  }
  0x5c   :  { %328 = vmatprep.mubr.bf16.mxu1 %v6819_v0  ;;  %492 = vmatprep.mubr.bf16.mxu0 %v6819_v0  ;;  %v108_v2 = vld [vmem:[#allocation5 + $0x40] sm:$0xff]  ;;  %v109_v9 = vld [vmem:[#allocation5 + $0x48] sm:$0xff]  ;;  %v98_v11 = vld [vmem:[#allocation2] sm:$0xff]  ;;  %vm6821_vm1 = vmmov 0   ;;  %vm5100_vm2 = vcmask 130048  }
  0x5d   :  { %v116_v3 = vld [vmem:[#allocation5 + $0x80] sm:$0xff]  ;;  %v5120_v4 = vcombine.high %v100_v1, %v108_v2  ;;  %v5119_v5 = vcombine.low %v100_v1, %v108_v2  ;;  %v5122_v12 = vcombine.high %v101_v8, %v109_v9  ;;  %v117_v14 = vld [vmem:[#allocation5 + $0x88] sm:$0xff]  ;;  %v6920_v17 = vpack.c.bf16 %v98_v11, %v98_v11  ;;  %v106_v24 = vld [vmem:[#allocation5 + $0x30] sm:$0xff] }
  0x5e   :  { %v124_v6 = vld [vmem:[#allocation5 + $0xc0] sm:$0xff]  ;;  %v125_v15 = vld [vmem:[#allocation5 + $0xc8] sm:$0xff]  ;;  %v5121_v22 = vcombine.low %v101_v8, %v109_v9  ;;  %v114_v25 = vld [vmem:[#allocation5 + $0x70] sm:$0xff] }
  0x5f   :  { %v5136_v7 = vcombine.high %v116_v3, %v124_v6  ;;  %296 = vmatprep.subr.bf16.mxu1 %v5120_v4  ;;  %v5135_v10 = vcombine.low %v116_v3, %v124_v6  ;;  %v104_v13 = vld [vmem:[#allocation5 + $0x20] sm:$0xff]  ;;  %v5138_v26 = vcombine.high %v117_v14, %v125_v15  ;;  %v102_v27 = vld [vmem:[#allocation5 + $0x10] sm:$0xff]  ;;  %v5132_v30 = vcombine.high %v106_v24, %v114_v25  ;;  %v103_v41 = vld [vmem:[#allocation5 + $0x18] sm:$0xff] }
  0x60   :  { %297 = vmatpush1.bf16.msra.mxu1 %v5119_v5  ;;  %v112_v16 = vld [vmem:[#allocation5 + $0x60] sm:$0xff]  ;;  %v110_v28 = vld [vmem:[#allocation5 + $0x50] sm:$0xff]  ;;  %v5137_v32 = vcombine.low %v117_v14, %v125_v15  ;;  %v5131_v37 = vcombine.low %v106_v24, %v114_v25  ;;  %v111_v42 = vld [vmem:[#allocation5 + $0x58] sm:$0xff] }
  0x61   :  { %298 = vmatprep.subr.bf16.mxu1 %v5136_v7  ;;  %v5128_v18 = vcombine.high %v104_v13, %v112_v16  ;;  %v5127_v19 = vcombine.low %v104_v13, %v112_v16  ;;  %v120_v20 = vld [vmem:[#allocation5 + $0xa0] sm:$0xff]  ;;  %v122_v31 = vld [vmem:[#allocation5 + $0xb0] sm:$0xff]  ;;  %v5124_v34 = vcombine.high %v102_v27, %v110_v28  ;;  %v5123_v39 = vcombine.low %v102_v27, %v110_v28  ;;  %v119_v47 = vld [vmem:[#allocation5 + $0x98] sm:$0xff] }
  0x62   :  { %v128_v21 = vld [vmem:[#allocation5 + $0xe0] sm:$0xff]  ;;  %v130_v33 = vld [vmem:[#allocation5 + $0xf0] sm:$0xff]  ;;  %v5126_v46 = vcombine.high %v103_v41, %v111_v42  ;;  %v127_v48 = vld [vmem:[#allocation5 + $0xd8] sm:$0xff]  ;;  %v5125_v51 = vcombine.low %v103_v41, %v111_v42 }
  0x63   :  { %v5144_v23 = vcombine.high %v120_v20, %v128_v21  ;;  %460 = vmatprep.subr.bf16.mxu0 %v5128_v18  ;;  %v5143_v29 = vcombine.low %v120_v20, %v128_v21  ;;  %v118_v35 = vld [vmem:[#allocation5 + $0x90] sm:$0xff]  ;;  %v5148_v38 = vcombine.high %v122_v31, %v130_v33  ;;  %v5147_v43 = vcombine.low %v122_v31, %v130_v33  ;;  %v105_v53 = vld [vmem:[#allocation5 + $0x28] sm:$0xff]  ;;  %v107_v2 = vld [vmem:[#allocation5 + $0x38] sm:$0xff] }
  0x64   :  { %299 = vmatpush1.bf16.msra.mxu1 %v5135_v10  ;;  %461 = vmatpush1.bf16.msra.mxu0 %v5127_v19  ;;  %v126_v36 = vld [vmem:[#allocation5 + $0xd0] sm:$0xff]  ;;  %v5142_v52 = vcombine.high %v119_v47, %v127_v48  ;;  %v113_v54 = vld [vmem:[#allocation5 + $0x68] sm:$0xff]  ;;  %v5141_v57 = vcombine.low %v119_v47, %v127_v48  ;;  %v115_v3 = vld [vmem:[#allocation5 + $0x78] sm:$0xff] }
  0x65   :  { %337 = vmatprep.subr.bf16.mxu1 %v5122_v12  ;;  %462 = vmatprep.subr.bf16.mxu0 %v5144_v23  ;;  %v5140_v40 = vcombine.high %v118_v35, %v126_v36  ;;  %v5859_v44 = vld [vmem:[#allocation7 + $0x4] ss:$16 sps:$4 sm:$0xff]   ;;  %v5139_v45 = vcombine.low %v118_v35, %v126_v36  ;;  %v5857_v49 = vld [vmem:[#allocation7] ss:$16 sps:$4 sm:$0xff]   ;;  %v5130_v58 = vcombine.high %v105_v53, %v113_v54  ;;  %v121_v59 = vld [vmem:[#allocation5 + $0xa8] sm:$0xff] }
  0x66   :  { %v5865_v50 = vld [vmem:[#allocation7 + $0x24] ss:$16 sps:$4 sm:$0xff]   ;;  %v5863_v55 = vld [vmem:[#allocation7 + $0x20] ss:$16 sps:$4 sm:$0xff]   ;;  %v129_v60 = vld [vmem:[#allocation5 + $0xe8] sm:$0xff]  ;;  %v5129_v63 = vcombine.low %v105_v53, %v113_v54  ;;  %v5134_v7 = vcombine.high %v107_v2, %v115_v3  ;;  %v5133_v12 = vcombine.low %v107_v2, %v115_v3 }
  0x67   :  { %5151 = vmatmul.mubr.msk.bf16.vlgmr.msra.gmra.mrb[0].mxu1 %vm292_vm0, %v6920_v17  ;;  %v5871_v56 = vld [vmem:[#allocation7 + $0x44] ss:$16 sps:$4 sm:$0xff]   ;;  %v5869_v61 = vld [vmem:[#allocation7 + $0x40] ss:$16 sps:$4 sm:$0xff]   ;;  %v5146_v1 = vcombine.high %v121_v59, %v129_v60  ;;  %v5145_v6 = vcombine.low %v121_v59, %v129_v60  ;;  %v123_v8 = vld [vmem:[#allocation5 + $0xb8] sm:$0xff] }
  0x68   :  { %338 = vmatpush1.bf16.msra.mxu1 %v5121_v22  ;;  %369 = vmatprep.mubr.bf16.mxu1 %v6819_v0  ;;  %v5877_v62 = vld [vmem:[#allocation7 + $0x64] ss:$16 sps:$4 sm:$0xff]   ;;  %v5875_v4 = vld [vmem:[#allocation7 + $0x60] ss:$16 sps:$4 sm:$0xff]   ;;  %v131_v9 = vld [vmem:[#allocation5 + $0xf8] sm:$0xff] }
  0x69   :  { %339 = vmatprep.subr.bf16.mxu1 %v5138_v26  ;;  %463 = vmatpush1.bf16.msra.mxu0 %v5143_v29  ;;  %v5883_v5 = vld [vmem:[#allocation7 + $0x84] ss:$16 sps:$4 sm:$0xff]   ;;  %v5881_v10 = vld [vmem:[#allocation7 + $0x80] ss:$16 sps:$4 sm:$0xff]   ;;  %v5150_v13 = vcombine.high %v123_v8, %v131_v9  ;;  %v5149_v16 = vcombine.low %v123_v8, %v131_v9  ;;  %v5862_v18 = vld [vmem:[#allocation7 + $0xc] ss:$16 sps:$4 sm:$0xff]  }
  0x6a   :  { %542 = vmatprep.subr.bf16.mxu0 %v5132_v30  ;;  %v5889_v11 = vld [vmem:[#allocation7 + $0xa4] ss:$16 sps:$4 sm:$0xff]   ;;  %v5887_v14 = vld [vmem:[#allocation7 + $0xa0] ss:$16 sps:$4 sm:$0xff]   ;;  %v5860_v21 = vld [vmem:[#allocation7 + $0x8] ss:$16 sps:$4 sm:$0xff]  }
  0x6b   :  { %v5895_v15 = vld [vmem:[#allocation7 + $0xc4] ss:$16 sps:$4 sm:$0xff]   ;;  %v5893_v19 = vld [vmem:[#allocation7 + $0xc0] ss:$16 sps:$4 sm:$0xff]   ;;  %v5868_v22 = vld [vmem:[#allocation7 + $0x2c] ss:$16 sps:$4 sm:$0xff]  }
  0x6c   :  { %340 = vmatpush1.bf16.msra.mxu1 %v5137_v32  ;;  %5155 = vmatmul.mubr.msk.bf16.vlgmr.msra.gmra.mrb[0].mxu0 %vm292_vm0, %v6920_v17  ;;  %v5901_v20 = vld [vmem:[#allocation7 + $0xe4] ss:$16 sps:$4 sm:$0xff]   ;;  %v5899_v23 = vld [vmem:[#allocation7 + $0xe0] ss:$16 sps:$4 sm:$0xff]   ;;  %v5866_v25 = vld [vmem:[#allocation7 + $0x28] ss:$16 sps:$4 sm:$0xff]  }
  0x6d   :  { %378 = vmatprep.subr.bf16.mxu1 %v5124_v34  ;;  %543 = vmatpush1.bf16.msra.mxu0 %v5131_v37  ;;  %v5907_v24 = vld [vmem:[#allocation7 + $0x104] ss:$16 sps:$4 sm:$0xff]   ;;  %v5874_v26 = vld [vmem:[#allocation7 + $0x4c] ss:$16 sps:$4 sm:$0xff]   ;;  %v5872_v28 = vld [vmem:[#allocation7 + $0x48] ss:$16 sps:$4 sm:$0xff]  }
  0x6e   :  { %574 = vmatprep.mubr.bf16.mxu0 %v6819_v0  ;;  %544 = vmatprep.subr.bf16.mxu0 %v5148_v38  ;;  %v5913_v27 = vld [vmem:[#allocation7 + $0x124] ss:$16 sps:$4 sm:$0xff]   ;;  %v5880_v29 = vld [vmem:[#allocation7 + $0x6c] ss:$16 sps:$4 sm:$0xff]   ;;  %v5911_v30 = vld [vmem:[#allocation7 + $0x120] ss:$16 sps:$4 sm:$0xff]  }
  0x6f   :  { %5152 = vmatmul.mubr.msk.bf16.vlgmr.msra.gmra.mrb[4].mxu1 %vm292_vm0, %v6920_v17  ;;  %v5919_v31 = vld [vmem:[#allocation7 + $0x144] ss:$16 sps:$4 sm:$0xff]   ;;  %v5878_v32 = vld [vmem:[#allocation7 + $0x68] ss:$16 sps:$4 sm:$0xff]   ;;  %v5886_v33 = vld [vmem:[#allocation7 + $0x8c] ss:$16 sps:$4 sm:$0xff]  }
  0x70   :  { %379 = vmatpush1.bf16.msra.mxu1 %v5123_v39  ;;  %410 = vmatprep.mubr.bf16.mxu1 %v6819_v0  ;;  %v5925_v34 = vld [vmem:[#allocation7 + $0x164] ss:$16 sps:$4 sm:$0xff]   ;;  %v5884_v35 = vld [vmem:[#allocation7 + $0x88] ss:$16 sps:$4 sm:$0xff]   ;;  %v5892_v36 = vld [vmem:[#allocation7 + $0xac] ss:$16 sps:$4 sm:$0xff]  }
  0x71   :  { %380 = vmatprep.subr.bf16.mxu1 %v5140_v40  ;;  %545 = vmatpush1.bf16.msra.mxu0 %v5147_v43  ;;  %v5923_v37 = vld [vmem:[#allocation7 + $0x160] ss:$16 sps:$4 sm:$0xff]   ;;  %v5931_v38 = vld [vmem:[#allocation7 + $0x184] ss:$16 sps:$4 sm:$0xff]   ;;  %v5890_v39 = vld [vmem:[#allocation7 + $0xa8] ss:$16 sps:$4 sm:$0xff]  }
  0x72   :  { %3924 = vmatprep.subr.bf16.mxu0 %v5859_v44  ;;  %v5898_v40 = vld [vmem:[#allocation7 + $0xcc] ss:$16 sps:$4 sm:$0xff]   ;;  %v5929_v41 = vld [vmem:[#allocation7 + $0x180] ss:$16 sps:$4 sm:$0xff]   ;;  %v5937_v42 = vld [vmem:[#allocation7 + $0x1a4] ss:$16 sps:$4 sm:$0xff]  }
  0x73   :  { %v5896_v43 = vld [vmem:[#allocation7 + $0xc8] ss:$16 sps:$4 sm:$0xff]   ;;  %v5904_v44 = vld [vmem:[#allocation7 + $0xec] ss:$16 sps:$4 sm:$0xff]   ;;  %v5941_v59 = vld [vmem:[#allocation7 + $0x1c0] ss:$16 sps:$4 sm:$0xff]  }
  0x74   :  { %381 = vmatpush1.bf16.msra.mxu1 %v5139_v45  ;;  %5157 = vmatmul.mubr.msk.bf16.vlgmr.msra.gmra.mrb[4].mxu0 %vm292_vm0, %v6920_v17  ;;  %v5935_v45 = vld [vmem:[#allocation7 + $0x1a0] ss:$16 sps:$4 sm:$0xff]   ;;  %v5910_v47 = vld [vmem:[#allocation7 + $0x10c] ss:$16 sps:$4 sm:$0xff]   ;;  %v5908_v48 = vld [vmem:[#allocation7 + $0x108] ss:$16 sps:$4 sm:$0xff]  }
  0x75   :  { %419 = vmatprep.subr.bf16.mxu1 %v5126_v46  ;;  %3925 = vmatpush1.bf16.msra.mxu0 %v5857_v49  ;;  %v5902_v46 = vld [vmem:[#allocation7 + $0xe8] ss:$16 sps:$4 sm:$0xff]   ;;  %v5916_v49 = vld [vmem:[#allocation7 + $0x12c] ss:$16 sps:$4 sm:$0xff]   ;;  %v6946_v8 = vld [vmem:[#allocation10] sm:$0xff] }
  0x76   :  { %3926 = vmatprep.subr.bf16.mxu0 %v5865_v50  ;;  %v5914_v50 = vld [vmem:[#allocation7 + $0x128] ss:$16 sps:$4 sm:$0xff]   ;;  %v5928_v53 = vld [vmem:[#allocation7 + $0x16c] ss:$16 sps:$4 sm:$0xff]  }
  0x77   :  { %5153 = vmatmul.mubr.msk.bf16.vlgmr.msra.gmra.mrb[8].mxu1 %vm292_vm0, %v6920_v17  ;;  %v5926_v54 = vld [vmem:[#allocation7 + $0x168] ss:$16 sps:$4 sm:$0xff]   ;;  %v5952_v3 = vld [vmem:[#allocation7 + $0x1ec] ss:$16 sps:$4 sm:$0xff]  }
  0x78   :  { %420 = vmatpush1.bf16.msra.mxu1 %v5125_v51  ;;  %451 = vmatprep.mubr.bf16.mxu1 %v6819_v0  ;;  %v5922_v51 = vld [vmem:[#allocation7 + $0x14c] ss:$16 sps:$4 sm:$0xff]   ;;  %v5938_v60 = vld [vmem:[#allocation7 + $0x1a8] ss:$16 sps:$4 sm:$0xff]  }
  0x79   :  { %421 = vmatprep.subr.bf16.mxu1 %v5142_v52  ;;  %3927 = vmatpush1.bf16.msra.mxu0 %v5863_v55  ;;  %v5920_v52 = vld [vmem:[#allocation7 + $0x148] ss:$16 sps:$4 sm:$0xff]   ;;  %v5934_v55 = vld [vmem:[#allocation7 + $0x18c] ss:$16 sps:$4 sm:$0xff]  }
  0x7a   :  { %3928 = vmatprep.subr.bf16.mxu0 %v5871_v56  ;;  %v5932_v56 = vld [vmem:[#allocation7 + $0x188] ss:$16 sps:$4 sm:$0xff]  }
  0x7b   :  { %v5944_v2 = vld [vmem:[#allocation7 + $0x1c8] ss:$16 sps:$4 sm:$0xff]  }
  0x7c   :  { %422 = vmatpush1.bf16.msra.mxu1 %v5141_v57  ;;  %v5943_v57 = vld [vmem:[#allocation7 + $0x1c4] ss:$16 sps:$4 sm:$0xff]  }
  0x7d   :  { %501 = vmatprep.subr.bf16.mxu1 %v5130_v58  ;;  %3929 = vmatpush1.bf16.msra.mxu0 %v5869_v61  ;;  %v5940_v58 = vld [vmem:[#allocation7 + $0x1ac] ss:$16 sps:$4 sm:$0xff]   ;;  %v5949_v61 = vld [vmem:[#allocation7 + $0x1e4] ss:$16 sps:$4 sm:$0xff]  }
  0x7e   :  { %3930 = vmatprep.subr.bf16.mxu0 %v5877_v62  ;;  %v5946_v62 = vld [vmem:[#allocation7 + $0x1cc] ss:$16 sps:$4 sm:$0xff]  }
  0x7f   :  { %5154 = vmatmul.mubr.msk.bf16.vlgmr.msra.gmra.mrb[12].mxu1 %vm292_vm0, %v6920_v17 }
  0x80   :  { %502 = vmatpush1.bf16.msra.mxu1 %v5129_v63  ;;  %533 = vmatprep.mubr.bf16.mxu1 %v6819_v0  ;;  %v5947_v63 = vld [vmem:[#allocation7 + $0x1e0] ss:$16 sps:$4 sm:$0xff]  }
  0x81   :  { %503 = vmatprep.subr.bf16.mxu1 %v5146_v1  ;;  %3931 = vmatpush1.bf16.msra.mxu0 %v5875_v4  ;;  %v5955_v1 = vld [vmem:[#allocation7 + $0x204] ss:$16 sps:$4 sm:$0xff]   ;;  %v5950_v4 = vld [vmem:[#allocation7 + $0x1e8] ss:$16 sps:$4 sm:$0xff]  }
  0x82   :  { %3932 = vmatprep.subr.bf16.mxu0 %v5883_v5  ;;  %v5958_v5 = vld [vmem:[#allocation7 + $0x20c] ss:$16 sps:$4 sm:$0xff]  }
  0x84   :  { %504 = vmatpush1.bf16.msra.mxu1 %v5145_v6  ;;  %v626_v6 = vlaneseq }
  0x85   :  { %583 = vmatprep.subr.bf16.mxu1 %v5134_v7  ;;  %3933 = vmatpush1.bf16.msra.mxu0 %v5881_v10 }
  0x86   :  { %3934 = vmatprep.subr.bf16.mxu0 %v5889_v11  ;;  %v6944_v7 = vshrl.u32 %v626_v6, 7  ;;  %v6954_v11 = vld [vmem:[#allocation10 + $0x10] sm:$0xff] }
  0x87   :  { %5156 = vmatmul.mubr.msk.bf16.vlgmr.msra.gmra.mrb[16].mxu1 %vm292_vm0, %v6920_v17  ;;  %v5985_v6 = vld [vmem:[#allocation7 + $0x2a4] ss:$16 sps:$4 sm:$0xff]  }
  0x88   :  { %584 = vmatpush1.bf16.msra.mxu1 %v5133_v12  ;;  %615 = vmatprep.mubr.bf16.mxu1 %v6819_v0  ;;  %v5905_v0 = vld [vmem:[#allocation7 + $0x100] ss:$16 sps:$4 sm:$0xff]   ;;  %v6949_v9 = vsub.s32 0, %v6944_v7  ;;  %v6952_v10 = vsub.s32 1, %v6944_v7 }
  0x89   :  { %585 = vmatprep.subr.bf16.mxu1 %v5150_v13  ;;  %3935 = vmatpush1.bf16.msra.mxu0 %v5887_v14 }
  0x8a   :  { %3936 = vmatprep.subr.bf16.mxu0 %v5895_v15  ;;  %v629_v12 = vrot.slane %v6946_v8, %v6949_v9  ;;  %v633_v13 = vrot.slane %v6946_v8, %v6952_v10  ;;  %v727_v14 = vrot.slane %v6954_v11, %v6949_v9 }
  0x8c   :  { %586 = vmatpush1.bf16.msra.mxu1 %v5149_v16  ;;  %v731_v16 = vrot.slane %v6954_v11, %v6952_v10 }
  0x8d   :  { %4252 = vmatprep.subr.bf16.mxu1 %v5862_v18  ;;  %3937 = vmatpush1.bf16.msra.mxu0 %v5893_v19 }
  0x8e   :  { %3938 = vmatprep.subr.bf16.mxu0 %v5901_v20 }
  0x8f   :  { %5158 = vmatmul.mubr.msk.bf16.vlgmr.msra.gmra.mrb[20].mxu1 %vm292_vm0, %v6920_v17  ;;  %v5917_v17 = vld [vmem:[#allocation7 + $0x140] ss:$16 sps:$4 sm:$0xff]  }
  0x90   :  { %4253 = vmatpush1.bf16.msra.mxu1 %v5860_v21 }
  0x91   :  { %4254 = vmatprep.subr.bf16.mxu1 %v5868_v22  ;;  %3939 = vmatpush1.bf16.msra.mxu0 %v5899_v23  ;;  %v6965_v22 = vsub.s32 3, %v6944_v7 }
  0x92   :  { %3940 = vmatprep.subr.bf16.mxu0 %v5907_v24 }
  0x94   :  { %4255 = vmatpush1.bf16.msra.mxu1 %v5866_v25 }
  0x95   :  { %4256 = vmatprep.subr.bf16.mxu1 %v5874_v26  ;;  %3941 = vmatpush1.bf16.msra.mxu0 %v5905_v0 }
  0x96   :  { %3942 = vmatprep.subr.bf16.mxu0 %v5913_v27  ;;  %v5953_v27 = vld [vmem:[#allocation7 + $0x200] ss:$16 sps:$4 sm:$0xff]  }
  0x98   :  { %4257 = vmatpush1.bf16.msra.mxu1 %v5872_v28  ;;  %v5956_v28 = vld [vmem:[#allocation7 + $0x208] ss:$16 sps:$4 sm:$0xff]  }
  0x99   :  { %4258 = vmatprep.subr.bf16.mxu1 %v5880_v29  ;;  %3943 = vmatpush1.bf16.msra.mxu0 %v5911_v30  ;;  %v641_v29 = vrot.slane %v6946_v8, %v6965_v22 }
  0x9a   :  { %3944 = vmatprep.subr.bf16.mxu0 %v5919_v31 }
  0x9c   :  { %4259 = vmatpush1.bf16.msra.mxu1 %v5878_v32  ;;  %v739_v32 = vrot.slane %v6954_v11, %v6965_v22 }
  0x9d   :  { %4260 = vmatprep.subr.bf16.mxu1 %v5886_v33  ;;  %3945 = vmatpush1.bf16.msra.mxu0 %v5917_v17  ;;  %v5961_v17 = vld [vmem:[#allocation7 + $0x224] ss:$16 sps:$4 sm:$0xff]  }
  0x9e   :  { %3946 = vmatprep.subr.bf16.mxu0 %v5925_v34  ;;  %v5964_v34 = vld [vmem:[#allocation7 + $0x22c] ss:$16 sps:$4 sm:$0xff]  }
  0xa0   :  { %4261 = vmatpush1.bf16.msra.mxu1 %v5884_v35 }
  0xa1   :  { %4262 = vmatprep.subr.bf16.mxu1 %v5892_v36  ;;  %3947 = vmatpush1.bf16.msra.mxu0 %v5923_v37 }
  0xa2   :  { %3948 = vmatprep.subr.bf16.mxu0 %v5931_v38 }
  0xa4   :  { %4263 = vmatpush1.bf16.msra.mxu1 %v5890_v39  ;;  %v5959_v39 = vld [vmem:[#allocation7 + $0x220] ss:$16 sps:$4 sm:$0xff]  }
  0xa5   :  { %4264 = vmatprep.subr.bf16.mxu1 %v5898_v40  ;;  %3949 = vmatpush1.bf16.msra.mxu0 %v5929_v41  ;;  %v5962_v40 = vld [vmem:[#allocation7 + $0x228] ss:$16 sps:$4 sm:$0xff]  }
  0xa6   :  { %3950 = vmatprep.subr.bf16.mxu0 %v5937_v42  ;;  %v5967_v42 = vld [vmem:[#allocation7 + $0x244] ss:$16 sps:$4 sm:$0xff]  }
  0xa8   :  { %4265 = vmatpush1.bf16.msra.mxu1 %v5896_v43  ;;  %v5970_v43 = vld [vmem:[#allocation7 + $0x24c] ss:$16 sps:$4 sm:$0xff]  }
  0xa9   :  { %4266 = vmatprep.subr.bf16.mxu1 %v5904_v44  ;;  %3951 = vmatpush1.bf16.msra.mxu0 %v5935_v45  ;;  %v5965_v45 = vld [vmem:[#allocation7 + $0x240] ss:$16 sps:$4 sm:$0xff]  }
  0xaa   :  { %3952 = vmatprep.subr.bf16.mxu0 %v5943_v57 }
  0xac   :  { %4267 = vmatpush1.bf16.msra.mxu1 %v5902_v46  ;;  %v5968_v46 = vld [vmem:[#allocation7 + $0x248] ss:$16 sps:$4 sm:$0xff]  }
  0xad   :  { %4268 = vmatprep.subr.bf16.mxu1 %v5910_v47  ;;  %3953 = vmatpush1.bf16.msra.mxu0 %v5941_v59  ;;  %v5982_v59 = vld [vmem:[#allocation7 + $0x28c] ss:$16 sps:$4 sm:$0xff]  }
  0xae   :  { %3954 = vmatprep.subr.bf16.mxu0 %v5949_v61  ;;  %v5977_v61 = vld [vmem:[#allocation7 + $0x280] ss:$16 sps:$4 sm:$0xff]  }
  0xb0   :  { %4269 = vmatpush1.bf16.msra.mxu1 %v5908_v48 }
  0xb1   :  { %4270 = vmatprep.subr.bf16.mxu1 %v5916_v49  ;;  %3955 = vmatpush1.bf16.msra.mxu0 %v5947_v63  ;;  %v5973_v49 = vld [vmem:[#allocation7 + $0x264] ss:$16 sps:$4 sm:$0xff]   ;;  %v6982_v63 = vsub.s32 4, %v6944_v7 }
  0xb2   :  { %3965 = vmatprep.subr.bf16.mxu0 %v5955_v1  ;;  %v5980_v1 = vld [vmem:[#allocation7 + $0x288] ss:$16 sps:$4 sm:$0xff]  }
  0xb4   :  { %4271 = vmatpush1.bf16.msra.mxu1 %v5914_v50  ;;  %v5976_v50 = vld [vmem:[#allocation7 + $0x26c] ss:$16 sps:$4 sm:$0xff]  }
  0xb5   :  { %4272 = vmatprep.subr.bf16.mxu1 %v5922_v51 }
  0xb8   :  { %4273 = vmatpush1.bf16.msra.mxu1 %v5920_v52 }
  0xb9   :  { %4274 = vmatprep.subr.bf16.mxu1 %v5928_v53 }
  0xbc   :  { %4275 = vmatpush1.bf16.msra.mxu1 %v5926_v54 }
  0xbd   :  { %4276 = vmatprep.subr.bf16.mxu1 %v5934_v55  ;;  %v5971_v55 = vld [vmem:[#allocation7 + $0x260] ss:$16 sps:$4 sm:$0xff]  }
  0xc0   :  { %4277 = vmatpush1.bf16.msra.mxu1 %v5932_v56  ;;  %v5974_v56 = vld [vmem:[#allocation7 + $0x268] ss:$16 sps:$4 sm:$0xff]  }
  0xc1   :  { %4278 = vmatprep.subr.bf16.mxu1 %v5940_v58  ;;  %v5979_v58 = vld [vmem:[#allocation7 + $0x284] ss:$16 sps:$4 sm:$0xff]  }
  0xc4   :  { %4279 = vmatpush1.bf16.msra.mxu1 %v5938_v60 }
  0xc5   :  { %4280 = vmatprep.subr.bf16.mxu1 %v5946_v62 }
  0xc8   :  { %4281 = vmatpush1.bf16.msra.mxu1 %v5944_v2 }
  0xc9   :  { %4282 = vmatprep.subr.bf16.mxu1 %v5952_v3  ;;  %v6987_v3 = vsub.s32 6, %v6944_v7 }
  0xcc   :  { %4283 = vmatpush1.bf16.msra.mxu1 %v5950_v4  ;;  %v6989_v4 = vld [vmem:[#allocation10 + $0x8] sm:$0xff] }
  0xcd   :  { %4293 = vmatprep.subr.bf16.mxu1 %v5958_v5  ;;  %v6991_v5 = vld [vmem:[#allocation10 + $0x18] sm:$0xff] }
 0x13a   :  { %v330_v15 = vpop.f32.mrb[0].mxu1 }
 0x13b   :  { %v706_v18 = vmul.f32 %v629_v12, %v330_v15  ;;  %v332_v19 = vpop.f32.mrb[1].mxu1  ;;  %v5988_v12 = vld [vmem:[#allocation7 + $0x2ac] ss:$16 sps:$4 sm:$0xff]   ;;  %v677_v15 = vrot.slane %v6989_v4, %v6982_v63 }
 0x13c   :  { %v707_v20 = vmul.f32 %v633_v13, %v332_v19  ;;  %v334_v21 = vpop.f32.mrb[2].mxu1  ;;  %v7003_v19 = vsub.s32 5, %v6944_v7 }
 0x13d   :  { %v804_v23 = vadd.f32 %v727_v14, %v706_v18  ;;  %v335_v24 = vpop.f32.mrb[3].mxu1  ;;  %v7000_v18 = vsub.s32 2, %v6944_v7  ;;  %v685_v21 = vrot.slane %v6989_v4, %v6987_v3 }
 0x13e   :  { %v805_v25 = vadd.f32 %v731_v16, %v707_v20  ;;  %v775_v16 = vrot.slane %v6991_v5, %v6982_v63 }
 0x13f   :  { %v820_v26 = vmax.f32 %v804_v23, 0.0  ;;  %v6977_v53 = vpop.f32.mrb[0].mxu0  ;;  %v7008_v23 = vsub.s32 7, %v6944_v7  ;;  %v5991_v7 = vld [vmem:[#allocation7 + $0x2c4] ss:$16 sps:$4 sm:$0xff]  }
 0x140   :  { %v821_v0 = vmax.f32 %v805_v25, 0.0  ;;  %v6979_v57 = vpop.f32.mrb[1].mxu0 }
 0x141   :  { %v836_v33 = vpack.c.bf16 %v820_v26, %v820_v26  ;;  %v498_v60 = vpop.f32.mrb[2].mxu0  ;;  %v783_v26 = vrot.slane %v6991_v5, %v6987_v3 }
 0x142   :  { %v837_v30 = vpack.c.bf16 %v821_v0, %v821_v0  ;;  %v6969_v31 = vpop.f32.mrb[4].mxu1  ;;  %v499_v62 = vpop.f32.mrb[3].mxu0  ;;  %v5983_v0 = vld [vmem:[#allocation7 + $0x2a0] ss:$16 sps:$4 sm:$0xff]  }
 0x143   :  { %v373_v35 = vpop.f32.mrb[5].mxu1  ;;  %v6006_v62 = vld [vmem:[#allocation7 + $0x30c] ss:$16 sps:$4 sm:$0xff]  }
 0x144   :  { %3956 = vmatprep.mubr.bf16.mxu0 %v837_v30  ;;  %4284 = vmatprep.mubr.bf16.mxu1 %v837_v30  ;;  %v709_v36 = vmul.f32 %v641_v29, %v373_v35  ;;  %v375_v37 = vpop.f32.mrb[6].mxu1  ;;  %v681_v30 = vrot.slane %v6989_v4, %v7003_v19 }
 0x145   :  { %3957 = vmatmul.mubr.bf16.vlgmr.msra.gmra.mrb[8].mxu0 %v836_v33  ;;  %4285 = vmatmul.mubr.bf16.vlgmr.msra.gmra.mrb[24].mxu1 %v836_v33  ;;  %v376_v38 = vpop.f32.mrb[7].mxu1 }
 0x146   :  { %3966 = vmatpush1.bf16.msra.mxu0 %v5953_v27  ;;  %4294 = vmatpush1.bf16.msra.mxu1 %v5956_v28  ;;  %v807_v41 = vadd.f32 %v739_v32, %v709_v36  ;;  %v5986_v27 = vld [vmem:[#allocation7 + $0x2a8] ss:$16 sps:$4 sm:$0xff]   ;;  %v669_v28 = vrot.slane %v6989_v4, %v7000_v18  ;;  %v5994_v32 = vld [vmem:[#allocation7 + $0x2cc] ss:$16 sps:$4 sm:$0xff]   ;;  %v673_v36 = vrot.slane %v6989_v4, %v6965_v22 }
 0x147   :  { %3967 = vmatprep.subr.bf16.mxu0 %v5961_v17  ;;  %4295 = vmatprep.subr.bf16.mxu1 %v5964_v34  ;;  %v576_v14 = vpop.f32.mrb[4].mxu0  ;;  %v779_v17 = vrot.slane %v6991_v5, %v7003_v19  ;;  %v689_v34 = vrot.slane %v6989_v4, %v7008_v23  ;;  %v787_v38 = vrot.slane %v6991_v5, %v7008_v23 }
 0x148   :  { %v823_v44 = vmax.f32 %v807_v41, 0.0  ;;  %v718_v25 = vmul.f32 %v677_v15, %v576_v14  ;;  %v578_v29 = vpop.f32.mrb[5].mxu0  ;;  %v5989_v41 = vld [vmem:[#allocation7 + $0x2c0] ss:$16 sps:$4 sm:$0xff]   ;;  %v6012_v14 = vld [vmem:[#allocation7 + $0x32c] ss:$16 sps:$4 sm:$0xff]  }
 0x149   :  { %v580_v35 = vpop.f32.mrb[6].mxu0  ;;  %v719_v37 = vmul.f32 %v681_v30, %v578_v29  ;;  %v6015_v30 = vld [vmem:[#allocation7 + $0x344] ss:$16 sps:$4 sm:$0xff]  }
 0x14a   :  { %3968 = vmatpush1.bf16.msra.mxu0 %v5959_v39  ;;  %4296 = vmatpush1.bf16.msra.mxu1 %v5962_v40  ;;  %v839_v47 = vpack.c.bf16 %v823_v44, %v823_v44  ;;  %v6973_v48 = vpop.f32.mrb[8].mxu1  ;;  %v7016_v33 = vadd.f32 %v775_v16, %v718_v25  ;;  %v581_v39 = vpop.f32.mrb[7].mxu0  ;;  %v767_v40 = vrot.slane %v6991_v5, %v7000_v18  ;;  %v6022_v35 = vld [vmem:[#allocation7 + $0x368] ss:$16 sps:$4 sm:$0xff]  }
 0x14b   :  { %3969 = vmatprep.subr.bf16.mxu0 %v5967_v42  ;;  %4297 = vmatprep.subr.bf16.mxu1 %v5970_v43  ;;  %v6975_v51 = vpop.f32.mrb[9].mxu1  ;;  %v5992_v42 = vld [vmem:[#allocation7 + $0x2c8] ss:$16 sps:$4 sm:$0xff]   ;;  %v771_v44 = vrot.slane %v6991_v5, %v6965_v22  ;;  %v6025_v39 = vld [vmem:[#allocation7 + $0x380] ss:$16 sps:$4 sm:$0xff]  }
 0x14c   :  { %3997 = vmatprep.mubr.bf16.mxu0 %v839_v47  ;;  %4325 = vmatprep.mubr.bf16.mxu1 %v839_v47  ;;  %v416_v52 = vpop.f32.mrb[10].mxu1  ;;  %v6000_v47 = vld [vmem:[#allocation7 + $0x2ec] ss:$16 sps:$4 sm:$0xff]   ;;  %v6004_v5 = vld [vmem:[#allocation7 + $0x308] ss:$16 sps:$4 sm:$0xff]  }
 0x14d   :  { %v417_v54 = vpop.f32.mrb[11].mxu1 }
 0x14e   :  { %3970 = vmatpush1.bf16.msra.mxu0 %v5965_v45  ;;  %4298 = vmatpush1.bf16.msra.mxu1 %v5968_v46  ;;  %v7030_v45 = vadd.f32 %v779_v17, %v719_v37  ;;  %v5997_v46 = vld [vmem:[#allocation7 + $0x2e4] ss:$16 sps:$4 sm:$0xff]   ;;  %v6030_v37 = vld [vmem:[#allocation7 + $0x38c] ss:$16 sps:$4 sm:$0xff]  }
 0x14f   :  { %3971 = vmatprep.subr.bf16.mxu0 %v5973_v49  ;;  %4299 = vmatprep.subr.bf16.mxu1 %v5976_v50  ;;  %v6021_v17 = vld [vmem:[#allocation7 + $0x364] ss:$16 sps:$4 sm:$0xff]  }
 0x152   :  { %3972 = vmatpush1.bf16.msra.mxu0 %v5971_v55  ;;  %4300 = vmatpush1.bf16.msra.mxu1 %v5974_v56  ;;  %v6984_v2 = vpop.f32.mrb[12].mxu1 }
 0x153   :  { %3973 = vmatprep.subr.bf16.mxu0 %v5979_v58  ;;  %4301 = vmatprep.subr.bf16.mxu1 %v5982_v59  ;;  %v6993_v13 = vpop.f32.mrb[13].mxu1  ;;  %v5995_v58 = vld [vmem:[#allocation7 + $0x2e0] ss:$16 sps:$4 sm:$0xff]   ;;  %v5998_v59 = vld [vmem:[#allocation7 + $0x2e8] ss:$16 sps:$4 sm:$0xff]  }
 0x154   :  { %v457_v20 = vpop.f32.mrb[14].mxu1 }
 0x155   :  { %v458_v24 = vpop.f32.mrb[15].mxu1 }
 0x156   :  { %3974 = vmatpush1.bf16.msra.mxu0 %v5977_v61  ;;  %4302 = vmatpush1.bf16.msra.mxu1 %v5980_v1  ;;  %v6003_v61 = vld [vmem:[#allocation7 + $0x304] ss:$16 sps:$4 sm:$0xff]   ;;  %v6001_v1 = vld [vmem:[#allocation7 + $0x300] ss:$16 sps:$4 sm:$0xff]  }
 0x157   :  { %3975 = vmatprep.subr.bf16.mxu0 %v5985_v6  ;;  %4303 = vmatprep.subr.bf16.mxu1 %v5988_v12  ;;  %v6009_v12 = vld [vmem:[#allocation7 + $0x324] ss:$16 sps:$4 sm:$0xff]  }
 0x15a   :  { %3976 = vmatpush1.bf16.msra.mxu0 %v5983_v0  ;;  %4304 = vmatpush1.bf16.msra.mxu1 %v5986_v27  ;;  %v535_v43 = vpop.f32.mrb[16].mxu1  ;;  %v6007_v27 = vld [vmem:[#allocation7 + $0x320] ss:$16 sps:$4 sm:$0xff]  }
 0x15b   :  { %3977 = vmatprep.subr.bf16.mxu0 %v5991_v7  ;;  %4305 = vmatprep.subr.bf16.mxu1 %v5994_v32  ;;  %v716_v49 = vmul.f32 %v669_v28, %v535_v43  ;;  %v537_v50 = vpop.f32.mrb[17].mxu1  ;;  %v6010_v28 = vld [vmem:[#allocation7 + $0x328] ss:$16 sps:$4 sm:$0xff]   ;;  %v6018_v7 = vld [vmem:[#allocation7 + $0x34c] ss:$16 sps:$4 sm:$0xff]  }
 0x15c   :  { %v717_v52 = vmul.f32 %v673_v36, %v537_v50  ;;  %v539_v54 = vpop.f32.mrb[18].mxu1  ;;  %v6013_v32 = vld [vmem:[#allocation7 + $0x340] ss:$16 sps:$4 sm:$0xff]   ;;  %v6027_v36 = vld [vmem:[#allocation7 + $0x384] ss:$16 sps:$4 sm:$0xff]  }
 0x15d   :  { %v7032_v55 = vadd.f32 %v767_v40, %v716_v49  ;;  %v540_v56 = vpop.f32.mrb[19].mxu1  ;;  %v6028_v40 = vld [vmem:[#allocation7 + $0x388] ss:$16 sps:$4 sm:$0xff]   ;;  %v6033_v43 = vld [vmem:[#allocation7 + $0x3a4] ss:$16 sps:$4 sm:$0xff]  }
 0x15e   :  { %3978 = vmatpush1.bf16.msra.mxu0 %v5989_v41  ;;  %4306 = vmatpush1.bf16.msra.mxu1 %v5992_v42  ;;  %v7034_v60 = vadd.f32 %v771_v44, %v717_v52  ;;  %v735_v42 = vrot.slane %v6954_v11, %v7000_v18  ;;  %v6036_v44 = vld [vmem:[#allocation7 + $0x3ac] ss:$16 sps:$4 sm:$0xff]   ;;  %v6034_v49 = vld [vmem:[#allocation7 + $0x3a8] ss:$16 sps:$4 sm:$0xff]   ;;  %v6039_v52 = vld [vmem:[#allocation7 + $0x3c4] ss:$16 sps:$4 sm:$0xff]  }
 0x15f   :  { %3979 = vmatprep.subr.bf16.mxu0 %v5997_v46  ;;  %4307 = vmatprep.subr.bf16.mxu1 %v6000_v47  ;;  %v649_v46 = vrot.slane %v6946_v8, %v7003_v19  ;;  %v6031_v47 = vld [vmem:[#allocation7 + $0x3a0] ss:$16 sps:$4 sm:$0xff]   ;;  %v6042_v54 = vld [vmem:[#allocation7 + $0x3cc] ss:$16 sps:$4 sm:$0xff]  }
 0x161   :  { %v711_v56 = vmul.f32 %v649_v46, %v6975_v51  ;;  %v6054_v51 = vld [vmem:[#allocation7 + $0x40c] ss:$16 sps:$4 sm:$0xff]   ;;  %v6087_v46 = vld [vmem:[#allocation7 + $0x4c4] ss:$16 sps:$4 sm:$0xff]  }
 0x162   :  { %3980 = vmatpush1.bf16.msra.mxu0 %v5995_v58  ;;  %4308 = vmatpush1.bf16.msra.mxu1 %v5998_v59  ;;  %v617_v6 = vpop.f32.mrb[20].mxu1  ;;  %v6037_v58 = vld [vmem:[#allocation7 + $0x3c0] ss:$16 sps:$4 sm:$0xff]   ;;  %v6040_v59 = vld [vmem:[#allocation7 + $0x3c8] ss:$16 sps:$4 sm:$0xff]  }
 0x163   :  { %3981 = vmatprep.subr.bf16.mxu0 %v6003_v61  ;;  %4309 = vmatprep.subr.bf16.mxu1 %v6006_v62  ;;  %v720_v15 = vmul.f32 %v685_v21, %v617_v6  ;;  %v619_v16 = vpop.f32.mrb[21].mxu1  ;;  %v6016_v21 = vld [vmem:[#allocation7 + $0x348] ss:$16 sps:$4 sm:$0xff]   ;;  %v6045_v61 = vld [vmem:[#allocation7 + $0x3e4] ss:$16 sps:$4 sm:$0xff]  }
 0x164   :  { %v721_v20 = vmul.f32 %v689_v34, %v619_v16  ;;  %v621_v24 = vpop.f32.mrb[22].mxu1  ;;  %v6019_v34 = vld [vmem:[#allocation7 + $0x360] ss:$16 sps:$4 sm:$0xff]   ;;  %v6052_v16 = vld [vmem:[#allocation7 + $0x408] ss:$16 sps:$4 sm:$0xff]  }
 0x165   :  { %v7036_v25 = vadd.f32 %v783_v26, %v720_v15  ;;  %v622_v0 = vpop.f32.mrb[23].mxu1  ;;  %v6024_v26 = vld [vmem:[#allocation7 + $0x36c] ss:$16 sps:$4 sm:$0xff]   ;;  %v6043_v6 = vld [vmem:[#allocation7 + $0x3e0] ss:$16 sps:$4 sm:$0xff]  }
 0x166   :  { %3982 = vmatpush1.bf16.msra.mxu0 %v6001_v1  ;;  %4310 = vmatpush1.bf16.msra.mxu1 %v6004_v5  ;;  %v7038_v29 = vadd.f32 %v787_v38, %v721_v20  ;;  %v637_v38 = vrot.slane %v6946_v8, %v7000_v18  ;;  %v6048_v1 = vld [vmem:[#allocation7 + $0x3ec] ss:$16 sps:$4 sm:$0xff]   ;;  %v6057_v24 = vld [vmem:[#allocation7 + $0x424] ss:$16 sps:$4 sm:$0xff]  }
 0x167   :  { %3983 = vmatprep.subr.bf16.mxu0 %v6009_v12  ;;  %4311 = vmatprep.subr.bf16.mxu1 %v6012_v14  ;;  %v6046_v12 = vld [vmem:[#allocation7 + $0x3e8] ss:$16 sps:$4 sm:$0xff]   ;;  %v6051_v14 = vld [vmem:[#allocation7 + $0x404] ss:$16 sps:$4 sm:$0xff]   ;;  %v6060_v0 = vld [vmem:[#allocation7 + $0x42c] ss:$16 sps:$4 sm:$0xff]  }
 0x168   :  { %v708_v41 = vmul.f32 %v637_v38, %v6969_v31  ;;  %v747_v31 = vrot.slane %v6954_v11, %v7003_v19  ;;  %v6049_v19 = vld [vmem:[#allocation7 + $0x400] ss:$16 sps:$4 sm:$0xff]   ;;  %v6078_v38 = vld [vmem:[#allocation7 + $0x48c] ss:$16 sps:$4 sm:$0xff]  }
 0x16a   :  { %3984 = vmatpush1.bf16.msra.mxu0 %v6007_v27  ;;  %4312 = vmatpush1.bf16.msra.mxu1 %v6010_v28  ;;  %v806_v50 = vadd.f32 %v735_v42, %v708_v41  ;;  %v809_v5 = vadd.f32 %v747_v31, %v711_v56  ;;  %v6055_v27 = vld [vmem:[#allocation7 + $0x420] ss:$16 sps:$4 sm:$0xff]   ;;  %v6058_v28 = vld [vmem:[#allocation7 + $0x428] ss:$16 sps:$4 sm:$0xff]   ;;  %v6081_v41 = vld [vmem:[#allocation7 + $0x4a4] ss:$16 sps:$4 sm:$0xff]  }
 0x16b   :  { %3985 = vmatprep.subr.bf16.mxu0 %v6015_v30  ;;  %4313 = vmatprep.subr.bf16.mxu1 %v6018_v7  ;;  %v6063_v7 = vld [vmem:[#allocation7 + $0x444] ss:$16 sps:$4 sm:$0xff]   ;;  %v6084_v42 = vld [vmem:[#allocation7 + $0x4ac] ss:$16 sps:$4 sm:$0xff]   ;;  %v6091_v56 = vld [vmem:[#allocation7 + $0x4e0] ss:$16 sps:$4 sm:$0xff]  }
 0x16c   :  { %v822_v62 = vmax.f32 %v806_v50, 0.0  ;;  %v825_v15 = vmax.f32 %v809_v5, 0.0  ;;  %v6088_v50 = vld [vmem:[#allocation7 + $0x4c8] ss:$16 sps:$4 sm:$0xff]   ;;  %v6108_v5 = vld [vmem:[#allocation7 + $0x52c] ss:$16 sps:$4 sm:$0xff]  }
 0x16d   :  { %v6094_v31 = vld [vmem:[#allocation7 + $0x4e8] ss:$16 sps:$4 sm:$0xff]  }
 0x16e   :  { %3986 = vmatpush1.bf16.msra.mxu0 %v6013_v32  ;;  %4314 = vmatpush1.bf16.msra.mxu1 %v6016_v21  ;;  %v838_v20 = vpack.c.bf16 %v822_v62, %v822_v62  ;;  %v841_v30 = vpack.c.bf16 %v825_v15, %v825_v15  ;;  %v6066_v32 = vld [vmem:[#allocation7 + $0x44c] ss:$16 sps:$4 sm:$0xff]   ;;  %v6061_v21 = vld [vmem:[#allocation7 + $0x440] ss:$16 sps:$4 sm:$0xff]   ;;  %v6100_v62 = vld [vmem:[#allocation7 + $0x508] ss:$16 sps:$4 sm:$0xff]  }
 0x16f   :  { %3987 = vmatprep.subr.bf16.mxu0 %v6021_v17  ;;  %4315 = vmatprep.subr.bf16.mxu1 %v6024_v26  ;;  %v6064_v17 = vld [vmem:[#allocation7 + $0x448] ss:$16 sps:$4 sm:$0xff]   ;;  %v6069_v26 = vld [vmem:[#allocation7 + $0x464] ss:$16 sps:$4 sm:$0xff]   ;;  %v6109_v15 = vld [vmem:[#allocation7 + $0x540] ss:$16 sps:$4 sm:$0xff]  }
 0x172   :  { %3988 = vmatpush1.bf16.msra.mxu0 %v6019_v34  ;;  %4316 = vmatpush1.bf16.msra.mxu1 %v6022_v35  ;;  %v6072_v34 = vld [vmem:[#allocation7 + $0x46c] ss:$16 sps:$4 sm:$0xff]   ;;  %v6067_v35 = vld [vmem:[#allocation7 + $0x460] ss:$16 sps:$4 sm:$0xff]  }
 0x173   :  { %3989 = vmatprep.subr.bf16.mxu0 %v6027_v36  ;;  %4317 = vmatprep.subr.bf16.mxu1 %v6030_v37  ;;  %v6070_v36 = vld [vmem:[#allocation7 + $0x468] ss:$16 sps:$4 sm:$0xff]   ;;  %v6075_v37 = vld [vmem:[#allocation7 + $0x484] ss:$16 sps:$4 sm:$0xff]  }
 0x176   :  { %3990 = vmatpush1.bf16.msra.mxu0 %v6025_v39  ;;  %4318 = vmatpush1.bf16.msra.mxu1 %v6028_v40  ;;  %v6073_v39 = vld [vmem:[#allocation7 + $0x480] ss:$16 sps:$4 sm:$0xff]   ;;  %v6076_v40 = vld [vmem:[#allocation7 + $0x488] ss:$16 sps:$4 sm:$0xff]  }
 0x177   :  { %3991 = vmatprep.subr.bf16.mxu0 %v6033_v43  ;;  %4319 = vmatprep.subr.bf16.mxu1 %v6036_v44  ;;  %v6079_v43 = vld [vmem:[#allocation7 + $0x4a0] ss:$16 sps:$4 sm:$0xff]   ;;  %v6082_v44 = vld [vmem:[#allocation7 + $0x4a8] ss:$16 sps:$4 sm:$0xff]  }
 0x17a   :  { %3992 = vmatpush1.bf16.msra.mxu0 %v6031_v47  ;;  %4320 = vmatpush1.bf16.msra.mxu1 %v6034_v49  ;;  %v6090_v47 = vld [vmem:[#allocation7 + $0x4cc] ss:$16 sps:$4 sm:$0xff]   ;;  %v6085_v49 = vld [vmem:[#allocation7 + $0x4c0] ss:$16 sps:$4 sm:$0xff]  }
 0x17b   :  { %3993 = vmatprep.subr.bf16.mxu0 %v6039_v52  ;;  %4321 = vmatprep.subr.bf16.mxu1 %v6042_v54  ;;  %v6093_v52 = vld [vmem:[#allocation7 + $0x4e4] ss:$16 sps:$4 sm:$0xff]   ;;  %v6096_v54 = vld [vmem:[#allocation7 + $0x4ec] ss:$16 sps:$4 sm:$0xff]  }
 0x17e   :  { %3994 = vmatpush1.bf16.msra.mxu0 %v6037_v58  ;;  %4322 = vmatpush1.bf16.msra.mxu1 %v6040_v59  ;;  %v6099_v58 = vld [vmem:[#allocation7 + $0x504] ss:$16 sps:$4 sm:$0xff]   ;;  %v6102_v59 = vld [vmem:[#allocation7 + $0x50c] ss:$16 sps:$4 sm:$0xff]  }
 0x17f   :  { %3995 = vmatprep.subr.bf16.mxu0 %v6045_v61  ;;  %4323 = vmatprep.subr.bf16.mxu1 %v6048_v1  ;;  %v6097_v61 = vld [vmem:[#allocation7 + $0x500] ss:$16 sps:$4 sm:$0xff]   ;;  %v6105_v1 = vld [vmem:[#allocation7 + $0x524] ss:$16 sps:$4 sm:$0xff]  }
 0x182   :  { %3996 = vmatpush1.bf16.msra.mxu0 %v6043_v6  ;;  %4324 = vmatpush1.bf16.msra.mxu1 %v6046_v12  ;;  %v6103_v6 = vld [vmem:[#allocation7 + $0x520] ss:$16 sps:$4 sm:$0xff]   ;;  %v6106_v12 = vld [vmem:[#allocation7 + $0x528] ss:$16 sps:$4 sm:$0xff]  }
 0x183   :  { %4006 = vmatprep.subr.bf16.mxu0 %v6051_v14  ;;  %4334 = vmatprep.subr.bf16.mxu1 %v6054_v51  ;;  %v6111_v14 = vld [vmem:[#allocation7 + $0x544] ss:$16 sps:$4 sm:$0xff]   ;;  %v6114_v51 = vld [vmem:[#allocation7 + $0x54c] ss:$16 sps:$4 sm:$0xff]  }
 0x185   :  { %3998 = vmatmul.mubr.bf16.vlgmr.msra.gmra.mrb[8].mxu0 %v838_v20  ;;  %4326 = vmatmul.mubr.bf16.vlgmr.msra.gmra.mrb[24].mxu1 %v838_v20  ;;  %v6120_v20 = vld [vmem:[#allocation7 + $0x56c] ss:$16 sps:$4 sm:$0xff]  }
 0x186   :  { %4007 = vmatpush1.bf16.msra.mxu0 %v6049_v19  ;;  %4335 = vmatpush1.bf16.msra.mxu1 %v6052_v16  ;;  %v6112_v19 = vld [vmem:[#allocation7 + $0x548] ss:$16 sps:$4 sm:$0xff]   ;;  %v6117_v16 = vld [vmem:[#allocation7 + $0x564] ss:$16 sps:$4 sm:$0xff]  }
 0x187   :  { %4008 = vmatprep.subr.bf16.mxu0 %v6057_v24  ;;  %4336 = vmatprep.subr.bf16.mxu1 %v6060_v0  ;;  %v6115_v24 = vld [vmem:[#allocation7 + $0x560] ss:$16 sps:$4 sm:$0xff]   ;;  %v6118_v0 = vld [vmem:[#allocation7 + $0x568] ss:$16 sps:$4 sm:$0xff]  }
 0x188   :  { %4038 = vmatprep.mubr.bf16.mxu0 %v841_v30  ;;  %4366 = vmatprep.mubr.bf16.mxu1 %v841_v30  ;;  %v645_v30 = vrot.slane %v6946_v8, %v6982_v63 }
 0x18a   :  { %4009 = vmatpush1.bf16.msra.mxu0 %v6055_v27  ;;  %4337 = vmatpush1.bf16.msra.mxu1 %v6058_v28  ;;  %v6123_v27 = vld [vmem:[#allocation7 + $0x584] ss:$16 sps:$4 sm:$0xff]   ;;  %v6126_v28 = vld [vmem:[#allocation7 + $0x58c] ss:$16 sps:$4 sm:$0xff]  }
 0x18b   :  { %4010 = vmatprep.subr.bf16.mxu0 %v6063_v7  ;;  %4338 = vmatprep.subr.bf16.mxu1 %v6066_v32  ;;  %v6121_v7 = vld [vmem:[#allocation7 + $0x580] ss:$16 sps:$4 sm:$0xff]   ;;  %v6124_v32 = vld [vmem:[#allocation7 + $0x588] ss:$16 sps:$4 sm:$0xff]  }
 0x18e   :  { %4011 = vmatpush1.bf16.msra.mxu0 %v6061_v21  ;;  %4339 = vmatpush1.bf16.msra.mxu1 %v6064_v17  ;;  %v6129_v21 = vld [vmem:[#allocation7 + $0x5a4] ss:$16 sps:$4 sm:$0xff]   ;;  %v6132_v17 = vld [vmem:[#allocation7 + $0x5ac] ss:$16 sps:$4 sm:$0xff]  }
 0x18f   :  { %4012 = vmatprep.subr.bf16.mxu0 %v6069_v26  ;;  %4340 = vmatprep.subr.bf16.mxu1 %v6072_v34  ;;  %v657_v26 = vrot.slane %v6946_v8, %v7008_v23  ;;  %v710_v34 = vmul.f32 %v645_v30, %v6973_v48  ;;  %v6133_v8 = vld [vmem:[#allocation7 + $0x5c0] ss:$16 sps:$4 sm:$0xff]   ;;  %v6136_v48 = vld [vmem:[#allocation7 + $0x5c8] ss:$16 sps:$4 sm:$0xff]  }
 0x190   :  { %v6178_v30 = vld [vmem:[#allocation7 + $0x6a8] ss:$16 sps:$4 sm:$0xff]  }
 0x192   :  { %4013 = vmatpush1.bf16.msra.mxu0 %v6067_v35  ;;  %4341 = vmatpush1.bf16.msra.mxu1 %v6070_v36  ;;  %v743_v35 = vrot.slane %v6954_v11, %v6982_v63  ;;  %v6127_v36 = vld [vmem:[#allocation7 + $0x5a0] ss:$16 sps:$4 sm:$0xff]   ;;  %v6141_v63 = vld [vmem:[#allocation7 + $0x5e4] ss:$16 sps:$4 sm:$0xff]  }
 0x193   :  { %4014 = vmatprep.subr.bf16.mxu0 %v6075_v37  ;;  %4342 = vmatprep.subr.bf16.mxu1 %v6078_v38  ;;  %v6130_v37 = vld [vmem:[#allocation7 + $0x5a8] ss:$16 sps:$4 sm:$0xff]   ;;  %v6135_v38 = vld [vmem:[#allocation7 + $0x5c4] ss:$16 sps:$4 sm:$0xff]  }
 0x196   :  { %4015 = vmatpush1.bf16.msra.mxu0 %v6073_v39  ;;  %4343 = vmatpush1.bf16.msra.mxu1 %v6076_v40  ;;  %v6138_v39 = vld [vmem:[#allocation7 + $0x5cc] ss:$16 sps:$4 sm:$0xff]   ;;  %v713_v40 = vmul.f32 %v657_v26, %v6993_v13  ;;  %v6147_v13 = vld [vmem:[#allocation7 + $0x604] ss:$16 sps:$4 sm:$0xff]  }
 0x197   :  { %4016 = vmatprep.subr.bf16.mxu0 %v6081_v41  ;;  %4344 = vmatprep.subr.bf16.mxu1 %v6084_v42  ;;  %v755_v41 = vrot.slane %v6954_v11, %v7008_v23  ;;  %v808_v42 = vadd.f32 %v743_v35, %v710_v34  ;;  %v6189_v26 = vld [vmem:[#allocation7 + $0x6e4] ss:$16 sps:$4 sm:$0xff]   ;;  %v6192_v34 = vld [vmem:[#allocation7 + $0x6ec] ss:$16 sps:$4 sm:$0xff]   ;;  %v6187_v35 = vld [vmem:[#allocation7 + $0x6e0] ss:$16 sps:$4 sm:$0xff]  }
 0x19a   :  { %4017 = vmatpush1.bf16.msra.mxu0 %v6079_v43  ;;  %4345 = vmatpush1.bf16.msra.mxu1 %v6082_v44  ;;  %v6144_v43 = vld [vmem:[#allocation7 + $0x5ec] ss:$16 sps:$4 sm:$0xff]   ;;  %v811_v44 = vadd.f32 %v755_v41, %v713_v40  ;;  %v6196_v40 = vld [vmem:[#allocation7 + $0x708] ss:$16 sps:$4 sm:$0xff]   ;;  %v6201_v41 = vld [vmem:[#allocation7 + $0x724] ss:$16 sps:$4 sm:$0xff]  }
 0x19b   :  { %4018 = vmatprep.subr.bf16.mxu0 %v6087_v46  ;;  %4346 = vmatprep.subr.bf16.mxu1 %v6090_v47  ;;  %v824_v46 = vmax.f32 %v808_v42, 0.0  ;;  %v6139_v47 = vld [vmem:[#allocation7 + $0x5e0] ss:$16 sps:$4 sm:$0xff]   ;;  %v6204_v42 = vld [vmem:[#allocation7 + $0x72c] ss:$16 sps:$4 sm:$0xff]  }
 0x19c   :  { %v827_v11 = vmax.f32 %v811_v44, 0.0  ;;  %v6205_v44 = vld [vmem:[#allocation7 + $0x740] ss:$16 sps:$4 sm:$0xff]  }
 0x19d   :  { %v840_v23 = vpack.c.bf16 %v824_v46, %v824_v46  ;;  %v6208_v46 = vld [vmem:[#allocation7 + $0x748] ss:$16 sps:$4 sm:$0xff]  }
 0x19e   :  { %4019 = vmatpush1.bf16.msra.mxu0 %v6085_v49  ;;  %4347 = vmatpush1.bf16.msra.mxu1 %v6088_v50  ;;  %v6142_v49 = vld [vmem:[#allocation7 + $0x5e8] ss:$16 sps:$4 sm:$0xff]   ;;  %v6150_v50 = vld [vmem:[#allocation7 + $0x60c] ss:$16 sps:$4 sm:$0xff]  }
 0x19f   :  { %4020 = vmatprep.subr.bf16.mxu0 %v6093_v52  ;;  %4348 = vmatprep.subr.bf16.mxu1 %v6096_v54  ;;  %v6145_v52 = vld [vmem:[#allocation7 + $0x600] ss:$16 sps:$4 sm:$0xff]   ;;  %v6148_v54 = vld [vmem:[#allocation7 + $0x608] ss:$16 sps:$4 sm:$0xff]  }
 0x1a2   :  { %4021 = vmatpush1.bf16.msra.mxu0 %v6091_v56  ;;  %4349 = vmatpush1.bf16.msra.mxu1 %v6094_v31  ;;  %v6153_v56 = vld [vmem:[#allocation7 + $0x624] ss:$16 sps:$4 sm:$0xff]   ;;  %v6156_v31 = vld [vmem:[#allocation7 + $0x62c] ss:$16 sps:$4 sm:$0xff]  }
 0x1a3   :  { %4022 = vmatprep.subr.bf16.mxu0 %v6099_v58  ;;  %4350 = vmatprep.subr.bf16.mxu1 %v6102_v59  ;;  %v843_v58 = vpack.c.bf16 %v827_v11, %v827_v11  ;;  %v6151_v59 = vld [vmem:[#allocation7 + $0x620] ss:$16 sps:$4 sm:$0xff]   ;;  %v6219_v11 = vld [vmem:[#allocation7 + $0x784] ss:$16 sps:$4 sm:$0xff]  }
 0x1a6   :  { %4023 = vmatpush1.bf16.msra.mxu0 %v6097_v61  ;;  %4351 = vmatpush1.bf16.msra.mxu1 %v6100_v62  ;;  %v6154_v61 = vld [vmem:[#allocation7 + $0x628] ss:$16 sps:$4 sm:$0xff]   ;;  %v6159_v62 = vld [vmem:[#allocation7 + $0x644] ss:$16 sps:$4 sm:$0xff]  }
 0x1a7   :  { %4024 = vmatprep.subr.bf16.mxu0 %v6105_v1  ;;  %4352 = vmatprep.subr.bf16.mxu1 %v6108_v5  ;;  %v6162_v1 = vld [vmem:[#allocation7 + $0x64c] ss:$16 sps:$4 sm:$0xff]   ;;  %v6157_v5 = vld [vmem:[#allocation7 + $0x640] ss:$16 sps:$4 sm:$0xff]  }
 0x1aa   :  { %4025 = vmatpush1.bf16.msra.mxu0 %v6103_v6  ;;  %4353 = vmatpush1.bf16.msra.mxu1 %v6106_v12  ;;  %v6160_v6 = vld [vmem:[#allocation7 + $0x648] ss:$16 sps:$4 sm:$0xff]   ;;  %v6165_v12 = vld [vmem:[#allocation7 + $0x664] ss:$16 sps:$4 sm:$0xff]  }
 0x1ab   :  { %4026 = vmatprep.subr.bf16.mxu0 %v6111_v14  ;;  %4354 = vmatprep.subr.bf16.mxu1 %v6114_v51  ;;  %v6168_v14 = vld [vmem:[#allocation7 + $0x66c] ss:$16 sps:$4 sm:$0xff]   ;;  %v6163_v51 = vld [vmem:[#allocation7 + $0x660] ss:$16 sps:$4 sm:$0xff]  }
 0x1ae   :  { %4027 = vmatpush1.bf16.msra.mxu0 %v6109_v15  ;;  %4355 = vmatpush1.bf16.msra.mxu1 %v6112_v19  ;;  %v6166_v15 = vld [vmem:[#allocation7 + $0x668] ss:$16 sps:$4 sm:$0xff]   ;;  %v6171_v19 = vld [vmem:[#allocation7 + $0x684] ss:$16 sps:$4 sm:$0xff]  }
 0x1af   :  { %4028 = vmatprep.subr.bf16.mxu0 %v6117_v16  ;;  %4356 = vmatprep.subr.bf16.mxu1 %v6120_v20  ;;  %v6174_v16 = vld [vmem:[#allocation7 + $0x68c] ss:$16 sps:$4 sm:$0xff]   ;;  %v6169_v20 = vld [vmem:[#allocation7 + $0x680] ss:$16 sps:$4 sm:$0xff]  }
 0x1b2   :  { %4029 = vmatpush1.bf16.msra.mxu0 %v6115_v24  ;;  %4357 = vmatpush1.bf16.msra.mxu1 %v6118_v0  ;;  %v6172_v24 = vld [vmem:[#allocation7 + $0x688] ss:$16 sps:$4 sm:$0xff]   ;;  %v6177_v0 = vld [vmem:[#allocation7 + $0x6a4] ss:$16 sps:$4 sm:$0xff]  }
 0x1b3   :  { %4030 = vmatprep.subr.bf16.mxu0 %v6123_v27  ;;  %4358 = vmatprep.subr.bf16.mxu1 %v6126_v28  ;;  %v6180_v27 = vld [vmem:[#allocation7 + $0x6ac] ss:$16 sps:$4 sm:$0xff]   ;;  %v6175_v28 = vld [vmem:[#allocation7 + $0x6a0] ss:$16 sps:$4 sm:$0xff]  }
 0x1b6   :  { %4031 = vmatpush1.bf16.msra.mxu0 %v6121_v7  ;;  %4359 = vmatpush1.bf16.msra.mxu1 %v6124_v32  ;;  %v6183_v7 = vld [vmem:[#allocation7 + $0x6c4] ss:$16 sps:$4 sm:$0xff]   ;;  %v6186_v32 = vld [vmem:[#allocation7 + $0x6cc] ss:$16 sps:$4 sm:$0xff]  }
 0x1b7   :  { %4032 = vmatprep.subr.bf16.mxu0 %v6129_v21  ;;  %4360 = vmatprep.subr.bf16.mxu1 %v6132_v17  ;;  %v6181_v21 = vld [vmem:[#allocation7 + $0x6c0] ss:$16 sps:$4 sm:$0xff]   ;;  %v6184_v17 = vld [vmem:[#allocation7 + $0x6c8] ss:$16 sps:$4 sm:$0xff]  }
 0x1ba   :  { %4033 = vmatpush1.bf16.msra.mxu0 %v6127_v36  ;;  %4361 = vmatpush1.bf16.msra.mxu1 %v6130_v37  ;;  %v6190_v36 = vld [vmem:[#allocation7 + $0x6e8] ss:$16 sps:$4 sm:$0xff]   ;;  %v6195_v37 = vld [vmem:[#allocation7 + $0x704] ss:$16 sps:$4 sm:$0xff]  }
 0x1bb   :  { %4034 = vmatprep.subr.bf16.mxu0 %v6135_v38  ;;  %4362 = vmatprep.subr.bf16.mxu1 %v6138_v39  ;;  %v6198_v38 = vld [vmem:[#allocation7 + $0x70c] ss:$16 sps:$4 sm:$0xff]   ;;  %v6193_v39 = vld [vmem:[#allocation7 + $0x700] ss:$16 sps:$4 sm:$0xff]  }
 0x1be   :  { %4035 = vmatpush1.bf16.msra.mxu0 %v6133_v8  ;;  %4363 = vmatpush1.bf16.msra.mxu1 %v6136_v48  ;;  %v6199_v8 = vld [vmem:[#allocation7 + $0x720] ss:$16 sps:$4 sm:$0xff]   ;;  %v6202_v48 = vld [vmem:[#allocation7 + $0x728] ss:$16 sps:$4 sm:$0xff]  }
 0x1bf   :  { %4036 = vmatprep.subr.bf16.mxu0 %v6141_v63  ;;  %4364 = vmatprep.subr.bf16.mxu1 %v6144_v43  ;;  %v6207_v63 = vld [vmem:[#allocation7 + $0x744] ss:$16 sps:$4 sm:$0xff]   ;;  %v6210_v43 = vld [vmem:[#allocation7 + $0x74c] ss:$16 sps:$4 sm:$0xff]  }
 0x1c2   :  { %4037 = vmatpush1.bf16.msra.mxu0 %v6139_v47  ;;  %4365 = vmatpush1.bf16.msra.mxu1 %v6142_v49  ;;  %v6213_v47 = vld [vmem:[#allocation7 + $0x764] ss:$16 sps:$4 sm:$0xff]   ;;  %v6216_v49 = vld [vmem:[#allocation7 + $0x76c] ss:$16 sps:$4 sm:$0xff]  }
 0x1c3   :  { %4047 = vmatprep.subr.bf16.mxu0 %v6147_v13  ;;  %4375 = vmatprep.subr.bf16.mxu1 %v6150_v50  ;;  %v6211_v13 = vld [vmem:[#allocation7 + $0x760] ss:$16 sps:$4 sm:$0xff]   ;;  %v6214_v50 = vld [vmem:[#allocation7 + $0x768] ss:$16 sps:$4 sm:$0xff]  }
 0x1c5   :  { %4039 = vmatmul.mubr.bf16.vlgmr.msra.gmra.mrb[8].mxu0 %v840_v23  ;;  %4367 = vmatmul.mubr.bf16.vlgmr.msra.gmra.mrb[24].mxu1 %v840_v23  ;;  %v6222_v23 = vld [vmem:[#allocation7 + $0x78c] ss:$16 sps:$4 sm:$0xff]  }
 0x1c6   :  { %4048 = vmatpush1.bf16.msra.mxu0 %v6145_v52  ;;  %4376 = vmatpush1.bf16.msra.mxu1 %v6148_v54  ;;  %v6217_v52 = vld [vmem:[#allocation7 + $0x780] ss:$16 sps:$4 sm:$0xff]   ;;  %v6220_v54 = vld [vmem:[#allocation7 + $0x788] ss:$16 sps:$4 sm:$0xff]  }
 0x1c7   :  { %4049 = vmatprep.subr.bf16.mxu0 %v6153_v56  ;;  %4377 = vmatprep.subr.bf16.mxu1 %v6156_v31  ;;  %v6665_v56 = vld [vmem:[#allocation10] sm:$0xff] }
 0x1c8   :  { %4079 = vmatprep.mubr.bf16.mxu0 %v843_v58  ;;  %4407 = vmatprep.mubr.bf16.mxu1 %v843_v58  ;;  %v653_v31 = vrot.slane %v6665_v56, %v6987_v3  ;;  %v6225_v58 = vld [vmem:[#allocation7 + $0x7a4] ss:$16 sps:$4 sm:$0xff]   ;;  %v6277_v56 = vld [vmem:[#allocation7 + $0x8c0] ss:$16 sps:$4 sm:$0xff]  }
 0x1ca   :  { %4050 = vmatpush1.bf16.msra.mxu0 %v6151_v59  ;;  %4378 = vmatpush1.bf16.msra.mxu1 %v6154_v61  ;;  %v6228_v59 = vld [vmem:[#allocation7 + $0x7ac] ss:$16 sps:$4 sm:$0xff]   ;;  %v665_v61 = vrot.slane %v6989_v4, %v6952_v10 }
 0x1cb   :  { %4051 = vmatprep.subr.bf16.mxu0 %v6159_v62  ;;  %4379 = vmatprep.subr.bf16.mxu1 %v6162_v1  ;;  %v6223_v62 = vld [vmem:[#allocation7 + $0x7a0] ss:$16 sps:$4 sm:$0xff]   ;;  %v6226_v1 = vld [vmem:[#allocation7 + $0x7a8] ss:$16 sps:$4 sm:$0xff]  }
 0x1ce   :  { %4052 = vmatpush1.bf16.msra.mxu0 %v6157_v5  ;;  %4380 = vmatpush1.bf16.msra.mxu1 %v6160_v6  ;;  %v712_v5 = vmul.f32 %v653_v31, %v6984_v2  ;;  %v6666_v6 = vld [vmem:[#allocation10 + $0x10] sm:$0xff]  ;;  %v6280_v31 = vld [vmem:[#allocation7 + $0x8c8] ss:$16 sps:$4 sm:$0xff]  }
 0x1cf   :  { %4053 = vmatprep.subr.bf16.mxu0 %v6165_v12  ;;  %4381 = vmatprep.subr.bf16.mxu1 %v6168_v14  ;;  %v751_v12 = vrot.slane %v6666_v6, %v6987_v3  ;;  %v6231_v14 = vld [vmem:[#allocation7 + $0x7c4] ss:$16 sps:$4 sm:$0xff]   ;;  %v6240_v3 = vld [vmem:[#allocation7 + $0x7ec] ss:$16 sps:$4 sm:$0xff]   ;;  %v6289_v6 = vld [vmem:[#allocation7 + $0x900] ss:$16 sps:$4 sm:$0xff]  }
 0x1d0   :  { %v6237_v2 = vld [vmem:[#allocation7 + $0x7e4] ss:$16 sps:$4 sm:$0xff]  }
 0x1d2   :  { %4054 = vmatpush1.bf16.msra.mxu0 %v6163_v51  ;;  %4382 = vmatpush1.bf16.msra.mxu1 %v6166_v15  ;;  %v6234_v51 = vld [vmem:[#allocation7 + $0x7cc] ss:$16 sps:$4 sm:$0xff]   ;;  %v715_v15 = vmul.f32 %v665_v61, %v6979_v57  ;;  %v6283_v61 = vld [vmem:[#allocation7 + $0x8e0] ss:$16 sps:$4 sm:$0xff]  }
 0x1d3   :  { %4055 = vmatprep.subr.bf16.mxu0 %v6171_v19  ;;  %4383 = vmatprep.subr.bf16.mxu1 %v6174_v16  ;;  %v7066_v19 = vld [vmem:[#allocation10 + $0x18] sm:$0xff]  ;;  %v6229_v16 = vld [vmem:[#allocation7 + $0x7c0] ss:$16 sps:$4 sm:$0xff]  }
 0x1d4   :  { %v763_v4 = vrot.slane %v7066_v19, %v6952_v10 }
 0x1d6   :  { %4056 = vmatpush1.bf16.msra.mxu0 %v6169_v20  ;;  %4384 = vmatpush1.bf16.msra.mxu1 %v6172_v24  ;;  %v6232_v20 = vld [vmem:[#allocation7 + $0x7c8] ss:$16 sps:$4 sm:$0xff]   ;;  %v810_v24 = vadd.f32 %v751_v12, %v712_v5  ;;  %v6294_v5 = vld [vmem:[#allocation7 + $0x90c] ss:$16 sps:$4 sm:$0xff]  }
 0x1d7   :  { %4057 = vmatprep.subr.bf16.mxu0 %v6177_v0  ;;  %4385 = vmatprep.subr.bf16.mxu1 %v6180_v27  ;;  %v813_v0 = vadd.f32 %v763_v4, %v715_v15  ;;  %v6235_v27 = vld [vmem:[#allocation7 + $0x7e0] ss:$16 sps:$4 sm:$0xff]   ;;  %v6292_v12 = vld [vmem:[#allocation7 + $0x908] ss:$16 sps:$4 sm:$0xff]  }
 0x1d8   :  { %v826_v57 = vmax.f32 %v810_v24, 0.0  ;;  %v6295_v15 = vld [vmem:[#allocation7 + $0x920] ss:$16 sps:$4 sm:$0xff]   ;;  %v6298_v4 = vld [vmem:[#allocation7 + $0x928] ss:$16 sps:$4 sm:$0xff]  }
 0x1d9   :  { %v6301_v24 = vld [vmem:[#allocation7 + $0x940] ss:$16 sps:$4 sm:$0xff]  }
 0x1da   :  { %4058 = vmatpush1.bf16.msra.mxu0 %v6175_v28  ;;  %4386 = vmatpush1.bf16.msra.mxu1 %v6178_v30  ;;  %v6238_v28 = vld [vmem:[#allocation7 + $0x7e8] ss:$16 sps:$4 sm:$0xff]   ;;  %v6243_v30 = vld [vmem:[#allocation7 + $0x804] ss:$16 sps:$4 sm:$0xff]  }
 0x1db   :  { %4059 = vmatprep.subr.bf16.mxu0 %v6183_v7  ;;  %4387 = vmatprep.subr.bf16.mxu1 %v6186_v32  ;;  %v6246_v7 = vld [vmem:[#allocation7 + $0x80c] ss:$16 sps:$4 sm:$0xff]   ;;  %v829_v32 = vmax.f32 %v813_v0, 0.0 }
 0x1dc   :  { %v6312_v0 = vld [vmem:[#allocation7 + $0x96c] ss:$16 sps:$4 sm:$0xff]  }
 0x1de   :  { %4060 = vmatpush1.bf16.msra.mxu0 %v6181_v21  ;;  %4388 = vmatpush1.bf16.msra.mxu1 %v6184_v17  ;;  %v6241_v21 = vld [vmem:[#allocation7 + $0x800] ss:$16 sps:$4 sm:$0xff]   ;;  %v842_v17 = vpack.c.bf16 %v826_v57, %v826_v57  ;;  %v6315_v57 = vld [vmem:[#allocation7 + $0x984] ss:$16 sps:$4 sm:$0xff]  }
 0x1df   :  { %4061 = vmatprep.subr.bf16.mxu0 %v6189_v26  ;;  %4389 = vmatprep.subr.bf16.mxu1 %v6192_v34  ;;  %v6244_v26 = vld [vmem:[#allocation7 + $0x808] ss:$16 sps:$4 sm:$0xff]   ;;  %v845_v34 = vpack.c.bf16 %v829_v32, %v829_v32 }
 0x1e0   :  { %v6668_v32 = vld [vmem:[#allocation10 + $0x8] sm:$0xff] }
 0x1e2   :  { %4062 = vmatpush1.bf16.msra.mxu0 %v6187_v35  ;;  %4390 = vmatpush1.bf16.msra.mxu1 %v6190_v36  ;;  %v6249_v35 = vld [vmem:[#allocation7 + $0x824] ss:$16 sps:$4 sm:$0xff]   ;;  %v6252_v36 = vld [vmem:[#allocation7 + $0x82c] ss:$16 sps:$4 sm:$0xff]  }
 0x1e3   :  { %4063 = vmatprep.subr.bf16.mxu0 %v6195_v37  ;;  %4391 = vmatprep.subr.bf16.mxu1 %v6198_v38  ;;  %v6247_v37 = vld [vmem:[#allocation7 + $0x820] ss:$16 sps:$4 sm:$0xff]   ;;  %v6250_v38 = vld [vmem:[#allocation7 + $0x828] ss:$16 sps:$4 sm:$0xff]  }
 0x1e6   :  { %4064 = vmatpush1.bf16.msra.mxu0 %v6193_v39  ;;  %4392 = vmatpush1.bf16.msra.mxu1 %v6196_v40  ;;  %v6255_v39 = vld [vmem:[#allocation7 + $0x844] ss:$16 sps:$4 sm:$0xff]   ;;  %v6258_v40 = vld [vmem:[#allocation7 + $0x84c] ss:$16 sps:$4 sm:$0xff]  }
 0x1e7   :  { %4065 = vmatprep.subr.bf16.mxu0 %v6201_v41  ;;  %4393 = vmatprep.subr.bf16.mxu1 %v6204_v42  ;;  %v6253_v41 = vld [vmem:[#allocation7 + $0x840] ss:$16 sps:$4 sm:$0xff]   ;;  %v6256_v42 = vld [vmem:[#allocation7 + $0x848] ss:$16 sps:$4 sm:$0xff]  }
 0x1ea   :  { %4066 = vmatpush1.bf16.msra.mxu0 %v6199_v8  ;;  %4394 = vmatpush1.bf16.msra.mxu1 %v6202_v48  ;;  %v6261_v8 = vld [vmem:[#allocation7 + $0x864] ss:$16 sps:$4 sm:$0xff]   ;;  %v6264_v48 = vld [vmem:[#allocation7 + $0x86c] ss:$16 sps:$4 sm:$0xff]  }
 0x1eb   :  { %4067 = vmatprep.subr.bf16.mxu0 %v6207_v63  ;;  %4395 = vmatprep.subr.bf16.mxu1 %v6210_v43  ;;  %v6259_v63 = vld [vmem:[#allocation7 + $0x860] ss:$16 sps:$4 sm:$0xff]   ;;  %v6262_v43 = vld [vmem:[#allocation7 + $0x868] ss:$16 sps:$4 sm:$0xff]  }
 0x1ee   :  { %4068 = vmatpush1.bf16.msra.mxu0 %v6205_v44  ;;  %4396 = vmatpush1.bf16.msra.mxu1 %v6208_v46  ;;  %v6267_v44 = vld [vmem:[#allocation7 + $0x884] ss:$16 sps:$4 sm:$0xff]   ;;  %v6270_v46 = vld [vmem:[#allocation7 + $0x88c] ss:$16 sps:$4 sm:$0xff]  }
 0x1ef   :  { %4069 = vmatprep.subr.bf16.mxu0 %v6213_v47  ;;  %4397 = vmatprep.subr.bf16.mxu1 %v6216_v49  ;;  %v6265_v47 = vld [vmem:[#allocation7 + $0x880] ss:$16 sps:$4 sm:$0xff]   ;;  %v6268_v49 = vld [vmem:[#allocation7 + $0x888] ss:$16 sps:$4 sm:$0xff]  }
 0x1f2   :  { %4070 = vmatpush1.bf16.msra.mxu0 %v6211_v13  ;;  %4398 = vmatpush1.bf16.msra.mxu1 %v6214_v50  ;;  %v6273_v13 = vld [vmem:[#allocation7 + $0x8a4] ss:$16 sps:$4 sm:$0xff]   ;;  %v6276_v50 = vld [vmem:[#allocation7 + $0x8ac] ss:$16 sps:$4 sm:$0xff]  }
 0x1f3   :  { %4071 = vmatprep.subr.bf16.mxu0 %v6219_v11  ;;  %4399 = vmatprep.subr.bf16.mxu1 %v6222_v23  ;;  %v6271_v11 = vld [vmem:[#allocation7 + $0x8a0] ss:$16 sps:$4 sm:$0xff]   ;;  %v6274_v23 = vld [vmem:[#allocation7 + $0x8a8] ss:$16 sps:$4 sm:$0xff]  }
 0x1f6   :  { %4072 = vmatpush1.bf16.msra.mxu0 %v6217_v52  ;;  %4400 = vmatpush1.bf16.msra.mxu1 %v6220_v54  ;;  %v6279_v52 = vld [vmem:[#allocation7 + $0x8c4] ss:$16 sps:$4 sm:$0xff]   ;;  %v6282_v54 = vld [vmem:[#allocation7 + $0x8cc] ss:$16 sps:$4 sm:$0xff]  }
 0x1f7   :  { %4073 = vmatprep.subr.bf16.mxu0 %v6225_v58  ;;  %4401 = vmatprep.subr.bf16.mxu1 %v6228_v59  ;;  %v6285_v58 = vld [vmem:[#allocation7 + $0x8e4] ss:$16 sps:$4 sm:$0xff]   ;;  %v6288_v59 = vld [vmem:[#allocation7 + $0x8ec] ss:$16 sps:$4 sm:$0xff]  }
 0x1fa   :  { %4074 = vmatpush1.bf16.msra.mxu0 %v6223_v62  ;;  %4402 = vmatpush1.bf16.msra.mxu1 %v6226_v1  ;;  %v6286_v62 = vld [vmem:[#allocation7 + $0x8e8] ss:$16 sps:$4 sm:$0xff]   ;;  %v6291_v1 = vld [vmem:[#allocation7 + $0x904] ss:$16 sps:$4 sm:$0xff]  }
 0x1fb   :  { %4075 = vmatprep.subr.bf16.mxu0 %v6231_v14  ;;  %4403 = vmatprep.subr.bf16.mxu1 %v6234_v51  ;;  %v6297_v14 = vld [vmem:[#allocation7 + $0x924] ss:$16 sps:$4 sm:$0xff]   ;;  %v6300_v51 = vld [vmem:[#allocation7 + $0x92c] ss:$16 sps:$4 sm:$0xff]  }
 0x1fe   :  { %4076 = vmatpush1.bf16.msra.mxu0 %v6229_v16  ;;  %4404 = vmatpush1.bf16.msra.mxu1 %v6232_v20  ;;  %v6303_v16 = vld [vmem:[#allocation7 + $0x944] ss:$16 sps:$4 sm:$0xff]   ;;  %v6306_v20 = vld [vmem:[#allocation7 + $0x94c] ss:$16 sps:$4 sm:$0xff]  }
 0x1ff   :  { %4077 = vmatprep.subr.bf16.mxu0 %v6237_v2  ;;  %4405 = vmatprep.subr.bf16.mxu1 %v6240_v3  ;;  %v6304_v2 = vld [vmem:[#allocation7 + $0x948] ss:$16 sps:$4 sm:$0xff]   ;;  %v6309_v3 = vld [vmem:[#allocation7 + $0x964] ss:$16 sps:$4 sm:$0xff]  }
 0x202   :  { %4078 = vmatpush1.bf16.msra.mxu0 %v6235_v27  ;;  %4406 = vmatpush1.bf16.msra.mxu1 %v6238_v28  ;;  %v6307_v27 = vld [vmem:[#allocation7 + $0x960] ss:$16 sps:$4 sm:$0xff]   ;;  %v6310_v28 = vld [vmem:[#allocation7 + $0x968] ss:$16 sps:$4 sm:$0xff]  }
 0x203   :  { %4088 = vmatprep.subr.bf16.mxu0 %v6243_v30  ;;  %4416 = vmatprep.subr.bf16.mxu1 %v6246_v7  ;;  %v6318_v30 = vld [vmem:[#allocation7 + $0x98c] ss:$16 sps:$4 sm:$0xff]   ;;  %v6313_v7 = vld [vmem:[#allocation7 + $0x980] ss:$16 sps:$4 sm:$0xff]  }
 0x205   :  { %4080 = vmatmul.mubr.bf16.vlgmr.msra.gmra.mrb[8].mxu0 %v842_v17  ;;  %4408 = vmatmul.mubr.bf16.vlgmr.msra.gmra.mrb[24].mxu1 %v842_v17  ;;  %v6316_v17 = vld [vmem:[#allocation7 + $0x988] ss:$16 sps:$4 sm:$0xff]  }
 0x206   :  { %4089 = vmatpush1.bf16.msra.mxu0 %v6241_v21  ;;  %4120 = vmatprep.mubr.bf16.mxu0 %v845_v34  ;;  %v661_v21 = vrot.slane %v6668_v32, %v6949_v9  ;;  %v6390_v32 = vld [vmem:[#allocation7 + $0xb0c] ss:$16 sps:$4 sm:$0xff]  }
 0x207   :  { %4417 = vmatpush1.bf16.msra.mxu1 %v6244_v26  ;;  %4448 = vmatprep.mubr.bf16.mxu1 %v845_v34  ;;  %v6321_v26 = vld [vmem:[#allocation7 + $0x9a4] ss:$16 sps:$4 sm:$0xff]   ;;  %v6324_v34 = vld [vmem:[#allocation7 + $0x9ac] ss:$16 sps:$4 sm:$0xff]  }
 0x208   :  { %4090 = vmatprep.subr.bf16.mxu0 %v6249_v35  ;;  %4418 = vmatprep.subr.bf16.mxu1 %v6252_v36  ;;  %v6319_v35 = vld [vmem:[#allocation7 + $0x9a0] ss:$16 sps:$4 sm:$0xff]   ;;  %v714_v36 = vmul.f32 %v661_v21, %v6977_v53 }
 0x209   :  { %v6331_v53 = vld [vmem:[#allocation7 + $0x9e0] ss:$16 sps:$4 sm:$0xff]  }
 0x20a   :  { %4091 = vmatpush1.bf16.msra.mxu0 %v6247_v37  ;;  %v759_v37 = vrot.slane %v7066_v19, %v6949_v9  ;;  %v6334_v19 = vld [vmem:[#allocation7 + $0x9e8] ss:$16 sps:$4 sm:$0xff]   ;;  %v6385_v21 = vld [vmem:[#allocation7 + $0xb00] ss:$16 sps:$4 sm:$0xff]  }
 0x20b   :  { %4419 = vmatpush1.bf16.msra.mxu1 %v6250_v38  ;;  %4092 = vmatprep.subr.bf16.mxu0 %v6255_v39  ;;  %v6322_v38 = vld [vmem:[#allocation7 + $0x9a8] ss:$16 sps:$4 sm:$0xff]   ;;  %v6327_v39 = vld [vmem:[#allocation7 + $0x9c4] ss:$16 sps:$4 sm:$0xff]  }
 0x20c   :  { %4420 = vmatprep.subr.bf16.mxu1 %v6258_v40  ;;  %v6330_v40 = vld [vmem:[#allocation7 + $0x9cc] ss:$16 sps:$4 sm:$0xff]  }
 0x20e   :  { %4093 = vmatpush1.bf16.msra.mxu0 %v6253_v41  ;;  %v6325_v41 = vld [vmem:[#allocation7 + $0x9c0] ss:$16 sps:$4 sm:$0xff]  }
 0x20f   :  { %4421 = vmatpush1.bf16.msra.mxu1 %v6256_v42  ;;  %4094 = vmatprep.subr.bf16.mxu0 %v6261_v8  ;;  %v812_v42 = vadd.f32 %v759_v37, %v714_v36  ;;  %v6328_v8 = vld [vmem:[#allocation7 + $0x9c8] ss:$16 sps:$4 sm:$0xff]   ;;  %v6399_v37 = vld [vmem:[#allocation7 + $0xb44] ss:$16 sps:$4 sm:$0xff]  }
 0x210   :  { %4422 = vmatprep.subr.bf16.mxu1 %v6264_v48  ;;  %v6333_v48 = vld [vmem:[#allocation7 + $0x9e4] ss:$16 sps:$4 sm:$0xff]   ;;  %v6394_v36 = vld [vmem:[#allocation7 + $0xb28] ss:$16 sps:$4 sm:$0xff]  }
 0x212   :  { %4095 = vmatpush1.bf16.msra.mxu0 %v6259_v63  ;;  %v6336_v63 = vld [vmem:[#allocation7 + $0x9ec] ss:$16 sps:$4 sm:$0xff]  }
 0x213   :  { %4423 = vmatpush1.bf16.msra.mxu1 %v6262_v43  ;;  %4096 = vmatprep.subr.bf16.mxu0 %v6267_v44  ;;  %v828_v43 = vmax.f32 %v812_v42, 0.0  ;;  %v6339_v44 = vld [vmem:[#allocation7 + $0xa04] ss:$16 sps:$4 sm:$0xff]   ;;  %v6408_v42 = vld [vmem:[#allocation7 + $0xb6c] ss:$16 sps:$4 sm:$0xff]  }
 0x214   :  { %4424 = vmatprep.subr.bf16.mxu1 %v6270_v46  ;;  %v6342_v46 = vld [vmem:[#allocation7 + $0xa0c] ss:$16 sps:$4 sm:$0xff]  }
 0x216   :  { %4097 = vmatpush1.bf16.msra.mxu0 %v6265_v47  ;;  %v831_v47 = vmax.f32 %v7034_v60, 0.0  ;;  %v6354_v60 = vld [vmem:[#allocation7 + $0xa4c] ss:$16 sps:$4 sm:$0xff]  }
 0x217   :  { %4425 = vmatpush1.bf16.msra.mxu1 %v6268_v49  ;;  %4098 = vmatprep.subr.bf16.mxu0 %v6273_v13  ;;  %v6337_v49 = vld [vmem:[#allocation7 + $0xa00] ss:$16 sps:$4 sm:$0xff]   ;;  %v844_v13 = vpack.c.bf16 %v828_v43, %v828_v43 }
 0x218   :  { %4426 = vmatprep.subr.bf16.mxu1 %v6276_v50  ;;  %v6340_v50 = vld [vmem:[#allocation7 + $0xa08] ss:$16 sps:$4 sm:$0xff]   ;;  %v6409_v43 = vld [vmem:[#allocation7 + $0xb80] ss:$16 sps:$4 sm:$0xff]  }
 0x21a   :  { %4099 = vmatpush1.bf16.msra.mxu0 %v6271_v11  ;;  %v6345_v11 = vld [vmem:[#allocation7 + $0xa24] ss:$16 sps:$4 sm:$0xff]  }
 0x21b   :  { %4427 = vmatpush1.bf16.msra.mxu1 %v6274_v23  ;;  %4100 = vmatprep.subr.bf16.mxu0 %v6279_v52  ;;  %v847_v23 = vpack.c.bf16 %v831_v47, %v831_v47  ;;  %v6348_v52 = vld [vmem:[#allocation7 + $0xa2c] ss:$16 sps:$4 sm:$0xff]   ;;  %v6415_v47 = vld [vmem:[#allocation7 + $0xba0] ss:$16 sps:$4 sm:$0xff]  }
 0x21c   :  { %4428 = vmatprep.subr.bf16.mxu1 %v6282_v54  ;;  %v6343_v54 = vld [vmem:[#allocation7 + $0xa20] ss:$16 sps:$4 sm:$0xff]  }
 0x21e   :  { %4101 = vmatpush1.bf16.msra.mxu0 %v6277_v56  ;;  %v6346_v56 = vld [vmem:[#allocation7 + $0xa28] ss:$16 sps:$4 sm:$0xff]  }
 0x21f   :  { %4429 = vmatpush1.bf16.msra.mxu1 %v6280_v31  ;;  %4102 = vmatprep.subr.bf16.mxu0 %v6285_v58  ;;  %v6351_v31 = vld [vmem:[#allocation7 + $0xa44] ss:$16 sps:$4 sm:$0xff]   ;;  %v6349_v58 = vld [vmem:[#allocation7 + $0xa40] ss:$16 sps:$4 sm:$0xff]  }
 0x220   :  { %4430 = vmatprep.subr.bf16.mxu1 %v6288_v59  ;;  %v6352_v59 = vld [vmem:[#allocation7 + $0xa48] ss:$16 sps:$4 sm:$0xff]  }
 0x222   :  { %4103 = vmatpush1.bf16.msra.mxu0 %v6283_v61  ;;  %v6357_v61 = vld [vmem:[#allocation7 + $0xa64] ss:$16 sps:$4 sm:$0xff]  }
 0x223   :  { %4431 = vmatpush1.bf16.msra.mxu1 %v6286_v62  ;;  %4104 = vmatprep.subr.bf16.mxu0 %v6291_v1  ;;  %v6360_v62 = vld [vmem:[#allocation7 + $0xa6c] ss:$16 sps:$4 sm:$0xff]   ;;  %v6355_v1 = vld [vmem:[#allocation7 + $0xa60] ss:$16 sps:$4 sm:$0xff]  }
 0x224   :  { %4432 = vmatprep.subr.bf16.mxu1 %v6294_v5  ;;  %v6358_v5 = vld [vmem:[#allocation7 + $0xa68] ss:$16 sps:$4 sm:$0xff]  }
 0x226   :  { %4105 = vmatpush1.bf16.msra.mxu0 %v6289_v6  ;;  %v6363_v6 = vld [vmem:[#allocation7 + $0xa84] ss:$16 sps:$4 sm:$0xff]  }
 0x227   :  { %4433 = vmatpush1.bf16.msra.mxu1 %v6292_v12  ;;  %4106 = vmatprep.subr.bf16.mxu0 %v6297_v14  ;;  %v6366_v12 = vld [vmem:[#allocation7 + $0xa8c] ss:$16 sps:$4 sm:$0xff]   ;;  %v6361_v14 = vld [vmem:[#allocation7 + $0xa80] ss:$16 sps:$4 sm:$0xff]  }
 0x228   :  { %4434 = vmatprep.subr.bf16.mxu1 %v6300_v51  ;;  %v6364_v51 = vld [vmem:[#allocation7 + $0xa88] ss:$16 sps:$4 sm:$0xff]  }
 0x22a   :  { %4107 = vmatpush1.bf16.msra.mxu0 %v6295_v15  ;;  %v6369_v15 = vld [vmem:[#allocation7 + $0xaa4] ss:$16 sps:$4 sm:$0xff]  }
 0x22b   :  { %4435 = vmatpush1.bf16.msra.mxu1 %v6298_v4  ;;  %4108 = vmatprep.subr.bf16.mxu0 %v6303_v16  ;;  %v6372_v4 = vld [vmem:[#allocation7 + $0xaac] ss:$16 sps:$4 sm:$0xff]   ;;  %v6367_v16 = vld [vmem:[#allocation7 + $0xaa0] ss:$16 sps:$4 sm:$0xff]  }
 0x22c   :  { %4436 = vmatprep.subr.bf16.mxu1 %v6306_v20  ;;  %v6370_v20 = vld [vmem:[#allocation7 + $0xaa8] ss:$16 sps:$4 sm:$0xff]  }
 0x22e   :  { %4109 = vmatpush1.bf16.msra.mxu0 %v6301_v24  ;;  %v6375_v24 = vld [vmem:[#allocation7 + $0xac4] ss:$16 sps:$4 sm:$0xff]  }
 0x22f   :  { %4437 = vmatpush1.bf16.msra.mxu1 %v6304_v2  ;;  %4110 = vmatprep.subr.bf16.mxu0 %v6309_v3  ;;  %v6378_v2 = vld [vmem:[#allocation7 + $0xacc] ss:$16 sps:$4 sm:$0xff]   ;;  %v6373_v3 = vld [vmem:[#allocation7 + $0xac0] ss:$16 sps:$4 sm:$0xff]  }
 0x230   :  { %4438 = vmatprep.subr.bf16.mxu1 %v6312_v0  ;;  %v6376_v0 = vld [vmem:[#allocation7 + $0xac8] ss:$16 sps:$4 sm:$0xff]  }
 0x232   :  { %4111 = vmatpush1.bf16.msra.mxu0 %v6307_v27  ;;  %v6381_v27 = vld [vmem:[#allocation7 + $0xae4] ss:$16 sps:$4 sm:$0xff]  }
 0x233   :  { %4439 = vmatpush1.bf16.msra.mxu1 %v6310_v28  ;;  %4112 = vmatprep.subr.bf16.mxu0 %v6315_v57  ;;  %v6384_v28 = vld [vmem:[#allocation7 + $0xaec] ss:$16 sps:$4 sm:$0xff]   ;;  %v6379_v57 = vld [vmem:[#allocation7 + $0xae0] ss:$16 sps:$4 sm:$0xff]  }
 0x234   :  { %4440 = vmatprep.subr.bf16.mxu1 %v6318_v30  ;;  %v6382_v30 = vld [vmem:[#allocation7 + $0xae8] ss:$16 sps:$4 sm:$0xff]  }
 0x236   :  { %4113 = vmatpush1.bf16.msra.mxu0 %v6313_v7  ;;  %v6387_v7 = vld [vmem:[#allocation7 + $0xb04] ss:$16 sps:$4 sm:$0xff]  }
 0x237   :  { %4441 = vmatpush1.bf16.msra.mxu1 %v6316_v17  ;;  %4114 = vmatprep.subr.bf16.mxu0 %v6321_v26  ;;  %v6388_v17 = vld [vmem:[#allocation7 + $0xb08] ss:$16 sps:$4 sm:$0xff]   ;;  %v6393_v26 = vld [vmem:[#allocation7 + $0xb24] ss:$16 sps:$4 sm:$0xff]  }
 0x238   :  { %4442 = vmatprep.subr.bf16.mxu1 %v6324_v34  ;;  %v6396_v34 = vld [vmem:[#allocation7 + $0xb2c] ss:$16 sps:$4 sm:$0xff]  }
 0x23a   :  { %4115 = vmatpush1.bf16.msra.mxu0 %v6319_v35  ;;  %v6391_v35 = vld [vmem:[#allocation7 + $0xb20] ss:$16 sps:$4 sm:$0xff]  }
 0x23b   :  { %4443 = vmatpush1.bf16.msra.mxu1 %v6322_v38  ;;  %4116 = vmatprep.subr.bf16.mxu0 %v6327_v39  ;;  %v6402_v38 = vld [vmem:[#allocation7 + $0xb4c] ss:$16 sps:$4 sm:$0xff]   ;;  %v6397_v39 = vld [vmem:[#allocation7 + $0xb40] ss:$16 sps:$4 sm:$0xff]  }
 0x23c   :  { %4444 = vmatprep.subr.bf16.mxu1 %v6330_v40  ;;  %v6400_v40 = vld [vmem:[#allocation7 + $0xb48] ss:$16 sps:$4 sm:$0xff]  }
 0x23e   :  { %4117 = vmatpush1.bf16.msra.mxu0 %v6325_v41  ;;  %v6405_v41 = vld [vmem:[#allocation7 + $0xb64] ss:$16 sps:$4 sm:$0xff]  }
 0x23f   :  { %4445 = vmatpush1.bf16.msra.mxu1 %v6328_v8  ;;  %4118 = vmatprep.subr.bf16.mxu0 %v6333_v48  ;;  %v6403_v8 = vld [vmem:[#allocation7 + $0xb60] ss:$16 sps:$4 sm:$0xff]   ;;  %v6406_v48 = vld [vmem:[#allocation7 + $0xb68] ss:$16 sps:$4 sm:$0xff]  }
 0x240   :  { %4446 = vmatprep.subr.bf16.mxu1 %v6336_v63  ;;  %v6411_v63 = vld [vmem:[#allocation7 + $0xb84] ss:$16 sps:$4 sm:$0xff]  }
 0x242   :  { %4119 = vmatpush1.bf16.msra.mxu0 %v6331_v53  ;;  %v6414_v53 = vld [vmem:[#allocation7 + $0xb8c] ss:$16 sps:$4 sm:$0xff]  }
 0x243   :  { %4447 = vmatpush1.bf16.msra.mxu1 %v6334_v19  ;;  %4129 = vmatprep.subr.bf16.mxu0 %v6339_v44  ;;  %v6412_v19 = vld [vmem:[#allocation7 + $0xb88] ss:$16 sps:$4 sm:$0xff]   ;;  %v6417_v44 = vld [vmem:[#allocation7 + $0xba4] ss:$16 sps:$4 sm:$0xff]  }
 0x244   :  { %4457 = vmatprep.subr.bf16.mxu1 %v6342_v46  ;;  %v6420_v46 = vld [vmem:[#allocation7 + $0xbac] ss:$16 sps:$4 sm:$0xff]  }
 0x245   :  { %4121 = vmatmul.mubr.bf16.vlgmr.msra.gmra.mrb[8].mxu0 %v844_v13 }
 0x246   :  { %4449 = vmatmul.mubr.bf16.vlgmr.msra.gmra.mrb[24].mxu1 %v844_v13  ;;  %4130 = vmatpush1.bf16.msra.mxu0 %v6337_v49  ;;  %v6418_v49 = vld [vmem:[#allocation7 + $0xba8] ss:$16 sps:$4 sm:$0xff]   ;;  %v6423_v13 = vld [vmem:[#allocation7 + $0xbc4] ss:$16 sps:$4 sm:$0xff]  }
 0x247   :  { %4161 = vmatprep.mubr.bf16.mxu0 %v847_v23  ;;  %4458 = vmatpush1.bf16.msra.mxu1 %v6340_v50  ;;  %v6426_v50 = vld [vmem:[#allocation7 + $0xbcc] ss:$16 sps:$4 sm:$0xff]  }
 0x248   :  { %4489 = vmatprep.mubr.bf16.mxu1 %v847_v23  ;;  %4131 = vmatprep.subr.bf16.mxu0 %v6345_v11  ;;  %v6421_v11 = vld [vmem:[#allocation7 + $0xbc0] ss:$16 sps:$4 sm:$0xff]   ;;  %v6424_v23 = vld [vmem:[#allocation7 + $0xbc8] ss:$16 sps:$4 sm:$0xff]  }
 0x249   :  { %4459 = vmatprep.subr.bf16.mxu1 %v6348_v52  ;;  %v6429_v52 = vld [vmem:[#allocation7 + $0xbe4] ss:$16 sps:$4 sm:$0xff]  }
 0x24a   :  { %4132 = vmatpush1.bf16.msra.mxu0 %v6343_v54  ;;  %v6432_v54 = vld [vmem:[#allocation7 + $0xbec] ss:$16 sps:$4 sm:$0xff]  }
 0x24b   :  { %4460 = vmatpush1.bf16.msra.mxu1 %v6346_v56  ;;  %4133 = vmatprep.subr.bf16.mxu0 %v6351_v31  ;;  %v6427_v56 = vld [vmem:[#allocation7 + $0xbe0] ss:$16 sps:$4 sm:$0xff]   ;;  %v830_v31 = vmax.f32 %v7032_v55, 0.0 }
 0x24c   :  { %4461 = vmatprep.subr.bf16.mxu1 %v6354_v60  ;;  %v6430_v60 = vld [vmem:[#allocation7 + $0xbe8] ss:$16 sps:$4 sm:$0xff]   ;;  %v6439_v55 = vld [vmem:[#allocation7 + $0xc20] ss:$16 sps:$4 sm:$0xff]  }
 0x24e   :  { %4134 = vmatpush1.bf16.msra.mxu0 %v6349_v58  ;;  %v6435_v58 = vld [vmem:[#allocation7 + $0xc04] ss:$16 sps:$4 sm:$0xff]  }
 0x24f   :  { %4462 = vmatpush1.bf16.msra.mxu1 %v6352_v59  ;;  %4135 = vmatprep.subr.bf16.mxu0 %v6357_v61  ;;  %v6438_v59 = vld [vmem:[#allocation7 + $0xc0c] ss:$16 sps:$4 sm:$0xff]   ;;  %v833_v61 = vmax.f32 %v7030_v45, 0.0 }
 0x250   :  { %4463 = vmatprep.subr.bf16.mxu1 %v6360_v62  ;;  %v6433_v62 = vld [vmem:[#allocation7 + $0xc00] ss:$16 sps:$4 sm:$0xff]   ;;  %v6450_v45 = vld [vmem:[#allocation7 + $0xc4c] ss:$16 sps:$4 sm:$0xff]  }
 0x252   :  { %4136 = vmatpush1.bf16.msra.mxu0 %v6355_v1  ;;  %v846_v1 = vpack.c.bf16 %v830_v31, %v830_v31  ;;  %v6513_v31 = vld [vmem:[#allocation7 + $0xda4] ss:$16 sps:$4 sm:$0xff]  }
 0x253   :  { %4464 = vmatpush1.bf16.msra.mxu1 %v6358_v5  ;;  %4137 = vmatprep.subr.bf16.mxu0 %v6363_v6  ;;  %v6436_v5 = vld [vmem:[#allocation7 + $0xc08] ss:$16 sps:$4 sm:$0xff]   ;;  %v6441_v6 = vld [vmem:[#allocation7 + $0xc24] ss:$16 sps:$4 sm:$0xff]  }
 0x254   :  { %4465 = vmatprep.subr.bf16.mxu1 %v6366_v12  ;;  %v849_v12 = vpack.c.bf16 %v833_v61, %v833_v61  ;;  %v6519_v61 = vld [vmem:[#allocation7 + $0xdc4] ss:$16 sps:$4 sm:$0xff]  }
 0x256   :  { %4138 = vmatpush1.bf16.msra.mxu0 %v6361_v14  ;;  %v6444_v14 = vld [vmem:[#allocation7 + $0xc2c] ss:$16 sps:$4 sm:$0xff]  }
 0x257   :  { %4466 = vmatpush1.bf16.msra.mxu1 %v6364_v51  ;;  %4139 = vmatprep.subr.bf16.mxu0 %v6369_v15  ;;  %v6442_v51 = vld [vmem:[#allocation7 + $0xc28] ss:$16 sps:$4 sm:$0xff]   ;;  %v6447_v15 = vld [vmem:[#allocation7 + $0xc44] ss:$16 sps:$4 sm:$0xff]  }
 0x258   :  { %4467 = vmatprep.subr.bf16.mxu1 %v6372_v4  ;;  %v6445_v4 = vld [vmem:[#allocation7 + $0xc40] ss:$16 sps:$4 sm:$0xff]  }
 0x25a   :  { %4140 = vmatpush1.bf16.msra.mxu0 %v6367_v16  ;;  %v6448_v16 = vld [vmem:[#allocation7 + $0xc48] ss:$16 sps:$4 sm:$0xff]  }
 0x25b   :  { %4468 = vmatpush1.bf16.msra.mxu1 %v6370_v20  ;;  %4141 = vmatprep.subr.bf16.mxu0 %v6375_v24  ;;  %v6453_v20 = vld [vmem:[#allocation7 + $0xc64] ss:$16 sps:$4 sm:$0xff]   ;;  %v6456_v24 = vld [vmem:[#allocation7 + $0xc6c] ss:$16 sps:$4 sm:$0xff]  }
 0x25c   :  { %4469 = vmatprep.subr.bf16.mxu1 %v6378_v2  ;;  %v6451_v2 = vld [vmem:[#allocation7 + $0xc60] ss:$16 sps:$4 sm:$0xff]  }
 0x25e   :  { %4142 = vmatpush1.bf16.msra.mxu0 %v6373_v3  ;;  %v6454_v3 = vld [vmem:[#allocation7 + $0xc68] ss:$16 sps:$4 sm:$0xff]  }
 0x25f   :  { %4470 = vmatpush1.bf16.msra.mxu1 %v6376_v0  ;;  %4143 = vmatprep.subr.bf16.mxu0 %v6381_v27  ;;  %v6459_v0 = vld [vmem:[#allocation7 + $0xc84] ss:$16 sps:$4 sm:$0xff]   ;;  %v6462_v27 = vld [vmem:[#allocation7 + $0xc8c] ss:$16 sps:$4 sm:$0xff]  }
 0x260   :  { %4471 = vmatprep.subr.bf16.mxu1 %v6384_v28  ;;  %v6457_v28 = vld [vmem:[#allocation7 + $0xc80] ss:$16 sps:$4 sm:$0xff]  }
 0x262   :  { %4144 = vmatpush1.bf16.msra.mxu0 %v6379_v57  ;;  %v6460_v57 = vld [vmem:[#allocation7 + $0xc88] ss:$16 sps:$4 sm:$0xff]  }
 0x263   :  { %4472 = vmatpush1.bf16.msra.mxu1 %v6382_v30  ;;  %4145 = vmatprep.subr.bf16.mxu0 %v6387_v7  ;;  %v6465_v30 = vld [vmem:[#allocation7 + $0xca4] ss:$16 sps:$4 sm:$0xff]   ;;  %v6468_v7 = vld [vmem:[#allocation7 + $0xcac] ss:$16 sps:$4 sm:$0xff]  }
 0x264   :  { %4473 = vmatprep.subr.bf16.mxu1 %v6390_v32  ;;  %v6463_v32 = vld [vmem:[#allocation7 + $0xca0] ss:$16 sps:$4 sm:$0xff]  }
 0x266   :  { %4146 = vmatpush1.bf16.msra.mxu0 %v6385_v21  ;;  %v6466_v21 = vld [vmem:[#allocation7 + $0xca8] ss:$16 sps:$4 sm:$0xff]  }
 0x267   :  { %4474 = vmatpush1.bf16.msra.mxu1 %v6388_v17  ;;  %4147 = vmatprep.subr.bf16.mxu0 %v6393_v26  ;;  %v6471_v17 = vld [vmem:[#allocation7 + $0xcc4] ss:$16 sps:$4 sm:$0xff]   ;;  %v6474_v26 = vld [vmem:[#allocation7 + $0xccc] ss:$16 sps:$4 sm:$0xff]  }
 0x268   :  { %4475 = vmatprep.subr.bf16.mxu1 %v6396_v34  ;;  %v6469_v34 = vld [vmem:[#allocation7 + $0xcc0] ss:$16 sps:$4 sm:$0xff]  }
 0x26a   :  { %4148 = vmatpush1.bf16.msra.mxu0 %v6391_v35  ;;  %v6472_v35 = vld [vmem:[#allocation7 + $0xcc8] ss:$16 sps:$4 sm:$0xff]  }
 0x26b   :  { %4476 = vmatpush1.bf16.msra.mxu1 %v6394_v36  ;;  %4149 = vmatprep.subr.bf16.mxu0 %v6399_v37  ;;  %v6477_v36 = vld [vmem:[#allocation7 + $0xce4] ss:$16 sps:$4 sm:$0xff]   ;;  %v6480_v37 = vld [vmem:[#allocation7 + $0xcec] ss:$16 sps:$4 sm:$0xff]  }
 0x26c   :  { %4477 = vmatprep.subr.bf16.mxu1 %v6402_v38  ;;  %v6475_v38 = vld [vmem:[#allocation7 + $0xce0] ss:$16 sps:$4 sm:$0xff]  }
 0x26e   :  { %4150 = vmatpush1.bf16.msra.mxu0 %v6397_v39  ;;  %v6478_v39 = vld [vmem:[#allocation7 + $0xce8] ss:$16 sps:$4 sm:$0xff]  }
 0x26f   :  { %4478 = vmatpush1.bf16.msra.mxu1 %v6400_v40  ;;  %4151 = vmatprep.subr.bf16.mxu0 %v6405_v41  ;;  %v6483_v40 = vld [vmem:[#allocation7 + $0xd04] ss:$16 sps:$4 sm:$0xff]   ;;  %v6486_v41 = vld [vmem:[#allocation7 + $0xd0c] ss:$16 sps:$4 sm:$0xff]  }
 0x270   :  { %4479 = vmatprep.subr.bf16.mxu1 %v6408_v42  ;;  %v6481_v42 = vld [vmem:[#allocation7 + $0xd00] ss:$16 sps:$4 sm:$0xff]  }
 0x272   :  { %4152 = vmatpush1.bf16.msra.mxu0 %v6403_v8  ;;  %v6484_v8 = vld [vmem:[#allocation7 + $0xd08] ss:$16 sps:$4 sm:$0xff]  }
 0x273   :  { %4480 = vmatpush1.bf16.msra.mxu1 %v6406_v48  ;;  %4153 = vmatprep.subr.bf16.mxu0 %v6411_v63  ;;  %v6489_v48 = vld [vmem:[#allocation7 + $0xd24] ss:$16 sps:$4 sm:$0xff]   ;;  %v6492_v63 = vld [vmem:[#allocation7 + $0xd2c] ss:$16 sps:$4 sm:$0xff]  }
 0x274   :  { %4481 = vmatprep.subr.bf16.mxu1 %v6414_v53  ;;  %v6487_v53 = vld [vmem:[#allocation7 + $0xd20] ss:$16 sps:$4 sm:$0xff]  }
 0x276   :  { %4154 = vmatpush1.bf16.msra.mxu0 %v6409_v43  ;;  %v6490_v43 = vld [vmem:[#allocation7 + $0xd28] ss:$16 sps:$4 sm:$0xff]  }
 0x277   :  { %4482 = vmatpush1.bf16.msra.mxu1 %v6412_v19  ;;  %4155 = vmatprep.subr.bf16.mxu0 %v6417_v44  ;;  %v6495_v19 = vld [vmem:[#allocation7 + $0xd44] ss:$16 sps:$4 sm:$0xff]   ;;  %v6498_v44 = vld [vmem:[#allocation7 + $0xd4c] ss:$16 sps:$4 sm:$0xff]  }
 0x278   :  { %4483 = vmatprep.subr.bf16.mxu1 %v6420_v46  ;;  %v6493_v46 = vld [vmem:[#allocation7 + $0xd40] ss:$16 sps:$4 sm:$0xff]  }
 0x27a   :  { %4156 = vmatpush1.bf16.msra.mxu0 %v6415_v47  ;;  %v6496_v47 = vld [vmem:[#allocation7 + $0xd48] ss:$16 sps:$4 sm:$0xff]  }
 0x27b   :  { %4484 = vmatpush1.bf16.msra.mxu1 %v6418_v49  ;;  %4157 = vmatprep.subr.bf16.mxu0 %v6423_v13  ;;  %v6501_v49 = vld [vmem:[#allocation7 + $0xd64] ss:$16 sps:$4 sm:$0xff]   ;;  %v6504_v13 = vld [vmem:[#allocation7 + $0xd6c] ss:$16 sps:$4 sm:$0xff]  }
 0x27c   :  { %4485 = vmatprep.subr.bf16.mxu1 %v6426_v50  ;;  %v6499_v50 = vld [vmem:[#allocation7 + $0xd60] ss:$16 sps:$4 sm:$0xff]  }
 0x27e   :  { %4158 = vmatpush1.bf16.msra.mxu0 %v6421_v11  ;;  %v6502_v11 = vld [vmem:[#allocation7 + $0xd68] ss:$16 sps:$4 sm:$0xff]  }
 0x27f   :  { %4486 = vmatpush1.bf16.msra.mxu1 %v6424_v23  ;;  %4159 = vmatprep.subr.bf16.mxu0 %v6429_v52  ;;  %v6507_v23 = vld [vmem:[#allocation7 + $0xd84] ss:$16 sps:$4 sm:$0xff]   ;;  %v6510_v52 = vld [vmem:[#allocation7 + $0xd8c] ss:$16 sps:$4 sm:$0xff]  }
 0x280   :  { %4487 = vmatprep.subr.bf16.mxu1 %v6432_v54  ;;  %v6505_v54 = vld [vmem:[#allocation7 + $0xd80] ss:$16 sps:$4 sm:$0xff]  }
 0x282   :  { %4160 = vmatpush1.bf16.msra.mxu0 %v6427_v56  ;;  %v6508_v56 = vld [vmem:[#allocation7 + $0xd88] ss:$16 sps:$4 sm:$0xff]  }
 0x283   :  { %4488 = vmatpush1.bf16.msra.mxu1 %v6430_v60  ;;  %4170 = vmatprep.subr.bf16.mxu0 %v6435_v58  ;;  %v6516_v60 = vld [vmem:[#allocation7 + $0xdac] ss:$16 sps:$4 sm:$0xff]   ;;  %v6511_v58 = vld [vmem:[#allocation7 + $0xda0] ss:$16 sps:$4 sm:$0xff]  }
 0x284   :  { %4498 = vmatprep.subr.bf16.mxu1 %v6438_v59  ;;  %v6514_v59 = vld [vmem:[#allocation7 + $0xda8] ss:$16 sps:$4 sm:$0xff]  }
 0x285   :  { %4162 = vmatmul.mubr.bf16.vlgmr.msra.gmra.mrb[8].mxu0 %v846_v1 }
 0x286   :  { %4490 = vmatmul.mubr.bf16.vlgmr.msra.gmra.mrb[24].mxu1 %v846_v1  ;;  %4171 = vmatpush1.bf16.msra.mxu0 %v6433_v62  ;;  %v6522_v62 = vld [vmem:[#allocation7 + $0xdcc] ss:$16 sps:$4 sm:$0xff]   ;;  %v6517_v1 = vld [vmem:[#allocation7 + $0xdc0] ss:$16 sps:$4 sm:$0xff]  }
 0x287   :  { %4202 = vmatprep.mubr.bf16.mxu0 %v849_v12  ;;  %4499 = vmatpush1.bf16.msra.mxu1 %v6436_v5  ;;  %v6520_v5 = vld [vmem:[#allocation7 + $0xdc8] ss:$16 sps:$4 sm:$0xff]  }
 0x288   :  { %4530 = vmatprep.mubr.bf16.mxu1 %v849_v12  ;;  %4172 = vmatprep.subr.bf16.mxu0 %v6441_v6  ;;  %v6525_v6 = vld [vmem:[#allocation7 + $0xde4] ss:$16 sps:$4 sm:$0xff]   ;;  %v6528_v12 = vld [vmem:[#allocation7 + $0xdec] ss:$16 sps:$4 sm:$0xff]  }
 0x289   :  { %4500 = vmatprep.subr.bf16.mxu1 %v6444_v14  ;;  %v6523_v14 = vld [vmem:[#allocation7 + $0xde0] ss:$16 sps:$4 sm:$0xff]  }
 0x28a   :  { %4173 = vmatpush1.bf16.msra.mxu0 %v6439_v55  ;;  %v832_v55 = vmax.f32 %v7016_v33, 0.0  ;;  %v6535_v33 = vld [vmem:[#allocation7 + $0xe20] ss:$16 sps:$4 sm:$0xff]  }
 0x28b   :  { %4501 = vmatpush1.bf16.msra.mxu1 %v6442_v51  ;;  %4174 = vmatprep.subr.bf16.mxu0 %v6447_v15  ;;  %v6526_v51 = vld [vmem:[#allocation7 + $0xde8] ss:$16 sps:$4 sm:$0xff]   ;;  %v6531_v15 = vld [vmem:[#allocation7 + $0xe04] ss:$16 sps:$4 sm:$0xff]  }
 0x28c   :  { %4502 = vmatprep.subr.bf16.mxu1 %v6450_v45  ;;  %v6534_v45 = vld [vmem:[#allocation7 + $0xe0c] ss:$16 sps:$4 sm:$0xff]  }
 0x28e   :  { %4175 = vmatpush1.bf16.msra.mxu0 %v6445_v4  ;;  %v835_v4 = vmax.f32 %v7038_v29, 0.0  ;;  %v6546_v29 = vld [vmem:[#allocation7 + $0xe4c] ss:$16 sps:$4 sm:$0xff]  }
 0x28f   :  { %4503 = vmatpush1.bf16.msra.mxu1 %v6448_v16  ;;  %4176 = vmatprep.subr.bf16.mxu0 %v6453_v20  ;;  %v6529_v16 = vld [vmem:[#allocation7 + $0xe00] ss:$16 sps:$4 sm:$0xff]   ;;  %v848_v20 = vpack.c.bf16 %v832_v55, %v832_v55 }
 0x290   :  { %4504 = vmatprep.subr.bf16.mxu1 %v6456_v24  ;;  %v6532_v24 = vld [vmem:[#allocation7 + $0xe08] ss:$16 sps:$4 sm:$0xff]   ;;  %v6607_v55 = vld [vmem:[#allocation7 + $0xfa0] ss:$16 sps:$4 sm:$0xff]  }
 0x292   :  { %4177 = vmatpush1.bf16.msra.mxu0 %v6451_v2  ;;  %v6537_v2 = vld [vmem:[#allocation7 + $0xe24] ss:$16 sps:$4 sm:$0xff]  }
 0x293   :  { %4505 = vmatpush1.bf16.msra.mxu1 %v6454_v3  ;;  %4178 = vmatprep.subr.bf16.mxu0 %v6459_v0  ;;  %v851_v3 = vpack.c.bf16 %v835_v4, %v835_v4  ;;  %v6540_v0 = vld [vmem:[#allocation7 + $0xe2c] ss:$16 sps:$4 sm:$0xff]   ;;  %v6613_v4 = vld [vmem:[#allocation7 + $0xfc0] ss:$16 sps:$4 sm:$0xff]  }
 0x294   :  { %4506 = vmatprep.subr.bf16.mxu1 %v6462_v27  ;;  %v6538_v27 = vld [vmem:[#allocation7 + $0xe28] ss:$16 sps:$4 sm:$0xff]  }
 0x296   :  { %4179 = vmatpush1.bf16.msra.mxu0 %v6457_v28  ;;  %v6543_v28 = vld [vmem:[#allocation7 + $0xe44] ss:$16 sps:$4 sm:$0xff]  }
 0x297   :  { %4507 = vmatpush1.bf16.msra.mxu1 %v6460_v57  ;;  %4180 = vmatprep.subr.bf16.mxu0 %v6465_v30  ;;  %v6541_v57 = vld [vmem:[#allocation7 + $0xe40] ss:$16 sps:$4 sm:$0xff]   ;;  %v6544_v30 = vld [vmem:[#allocation7 + $0xe48] ss:$16 sps:$4 sm:$0xff]  }
 0x298   :  { %4508 = vmatprep.subr.bf16.mxu1 %v6468_v7  ;;  %v6549_v7 = vld [vmem:[#allocation7 + $0xe64] ss:$16 sps:$4 sm:$0xff]  }
 0x29a   :  { %4181 = vmatpush1.bf16.msra.mxu0 %v6463_v32  ;;  %v6552_v32 = vld [vmem:[#allocation7 + $0xe6c] ss:$16 sps:$4 sm:$0xff]  }
 0x29b   :  { %4509 = vmatpush1.bf16.msra.mxu1 %v6466_v21  ;;  %4182 = vmatprep.subr.bf16.mxu0 %v6471_v17  ;;  %v6547_v21 = vld [vmem:[#allocation7 + $0xe60] ss:$16 sps:$4 sm:$0xff]   ;;  %v6550_v17 = vld [vmem:[#allocation7 + $0xe68] ss:$16 sps:$4 sm:$0xff]  }
 0x29c   :  { %4510 = vmatprep.subr.bf16.mxu1 %v6474_v26  ;;  %v6555_v26 = vld [vmem:[#allocation7 + $0xe84] ss:$16 sps:$4 sm:$0xff]  }
 0x29e   :  { %4183 = vmatpush1.bf16.msra.mxu0 %v6469_v34  ;;  %v6558_v34 = vld [vmem:[#allocation7 + $0xe8c] ss:$16 sps:$4 sm:$0xff]  }
 0x29f   :  { %4511 = vmatpush1.bf16.msra.mxu1 %v6472_v35  ;;  %4184 = vmatprep.subr.bf16.mxu0 %v6477_v36  ;;  %v6553_v35 = vld [vmem:[#allocation7 + $0xe80] ss:$16 sps:$4 sm:$0xff]   ;;  %v6556_v36 = vld [vmem:[#allocation7 + $0xe88] ss:$16 sps:$4 sm:$0xff]  }
 0x2a0   :  { %4512 = vmatprep.subr.bf16.mxu1 %v6480_v37  ;;  %v6561_v37 = vld [vmem:[#allocation7 + $0xea4] ss:$16 sps:$4 sm:$0xff]  }
 0x2a2   :  { %4185 = vmatpush1.bf16.msra.mxu0 %v6475_v38  ;;  %v6564_v38 = vld [vmem:[#allocation7 + $0xeac] ss:$16 sps:$4 sm:$0xff]  }
 0x2a3   :  { %4513 = vmatpush1.bf16.msra.mxu1 %v6478_v39  ;;  %4186 = vmatprep.subr.bf16.mxu0 %v6483_v40  ;;  %v6559_v39 = vld [vmem:[#allocation7 + $0xea0] ss:$16 sps:$4 sm:$0xff]   ;;  %v6562_v40 = vld [vmem:[#allocation7 + $0xea8] ss:$16 sps:$4 sm:$0xff]  }
 0x2a4   :  { %4514 = vmatprep.subr.bf16.mxu1 %v6486_v41  ;;  %v6567_v41 = vld [vmem:[#allocation7 + $0xec4] ss:$16 sps:$4 sm:$0xff]  }
 0x2a6   :  { %4187 = vmatpush1.bf16.msra.mxu0 %v6481_v42  ;;  %v6570_v42 = vld [vmem:[#allocation7 + $0xecc] ss:$16 sps:$4 sm:$0xff]  }
 0x2a7   :  { %4515 = vmatpush1.bf16.msra.mxu1 %v6484_v8  ;;  %4188 = vmatprep.subr.bf16.mxu0 %v6489_v48  ;;  %v6565_v8 = vld [vmem:[#allocation7 + $0xec0] ss:$16 sps:$4 sm:$0xff]   ;;  %v6568_v48 = vld [vmem:[#allocation7 + $0xec8] ss:$16 sps:$4 sm:$0xff]  }
 0x2a8   :  { %4516 = vmatprep.subr.bf16.mxu1 %v6492_v63  ;;  %v6573_v63 = vld [vmem:[#allocation7 + $0xee4] ss:$16 sps:$4 sm:$0xff]  }
 0x2aa   :  { %4189 = vmatpush1.bf16.msra.mxu0 %v6487_v53  ;;  %v6576_v53 = vld [vmem:[#allocation7 + $0xeec] ss:$16 sps:$4 sm:$0xff]  }
 0x2ab   :  { %4517 = vmatpush1.bf16.msra.mxu1 %v6490_v43  ;;  %4190 = vmatprep.subr.bf16.mxu0 %v6495_v19  ;;  %v6571_v43 = vld [vmem:[#allocation7 + $0xee0] ss:$16 sps:$4 sm:$0xff]   ;;  %v6574_v19 = vld [vmem:[#allocation7 + $0xee8] ss:$16 sps:$4 sm:$0xff]  }
 0x2ac   :  { %4518 = vmatprep.subr.bf16.mxu1 %v6498_v44  ;;  %v6579_v44 = vld [vmem:[#allocation7 + $0xf04] ss:$16 sps:$4 sm:$0xff]  }
 0x2ae   :  { %4191 = vmatpush1.bf16.msra.mxu0 %v6493_v46  ;;  %v6582_v46 = vld [vmem:[#allocation7 + $0xf0c] ss:$16 sps:$4 sm:$0xff]  }
 0x2af   :  { %4519 = vmatpush1.bf16.msra.mxu1 %v6496_v47  ;;  %4192 = vmatprep.subr.bf16.mxu0 %v6501_v49  ;;  %v6577_v47 = vld [vmem:[#allocation7 + $0xf00] ss:$16 sps:$4 sm:$0xff]   ;;  %v6580_v49 = vld [vmem:[#allocation7 + $0xf08] ss:$16 sps:$4 sm:$0xff]  }
 0x2b0   :  { %4520 = vmatprep.subr.bf16.mxu1 %v6504_v13  ;;  %v6585_v13 = vld [vmem:[#allocation7 + $0xf24] ss:$16 sps:$4 sm:$0xff]  }
 0x2b2   :  { %4193 = vmatpush1.bf16.msra.mxu0 %v6499_v50  ;;  %v6588_v50 = vld [vmem:[#allocation7 + $0xf2c] ss:$16 sps:$4 sm:$0xff]  }
 0x2b3   :  { %4521 = vmatpush1.bf16.msra.mxu1 %v6502_v11  ;;  %4194 = vmatprep.subr.bf16.mxu0 %v6507_v23  ;;  %v6583_v11 = vld [vmem:[#allocation7 + $0xf20] ss:$16 sps:$4 sm:$0xff]   ;;  %v6586_v23 = vld [vmem:[#allocation7 + $0xf28] ss:$16 sps:$4 sm:$0xff]  }
 0x2b4   :  { %4522 = vmatprep.subr.bf16.mxu1 %v6510_v52  ;;  %v6591_v52 = vld [vmem:[#allocation7 + $0xf44] ss:$16 sps:$4 sm:$0xff]  }
 0x2b6   :  { %4195 = vmatpush1.bf16.msra.mxu0 %v6505_v54  ;;  %v6594_v54 = vld [vmem:[#allocation7 + $0xf4c] ss:$16 sps:$4 sm:$0xff]  }
 0x2b7   :  { %4523 = vmatpush1.bf16.msra.mxu1 %v6508_v56  ;;  %4196 = vmatprep.subr.bf16.mxu0 %v6513_v31  ;;  %v6589_v56 = vld [vmem:[#allocation7 + $0xf40] ss:$16 sps:$4 sm:$0xff]   ;;  %v6592_v31 = vld [vmem:[#allocation7 + $0xf48] ss:$16 sps:$4 sm:$0xff]  }
 0x2b8   :  { %4524 = vmatprep.subr.bf16.mxu1 %v6516_v60  ;;  %v6597_v60 = vld [vmem:[#allocation7 + $0xf64] ss:$16 sps:$4 sm:$0xff]  }
 0x2ba   :  { %4197 = vmatpush1.bf16.msra.mxu0 %v6511_v58  ;;  %v6600_v58 = vld [vmem:[#allocation7 + $0xf6c] ss:$16 sps:$4 sm:$0xff]  }
 0x2bb   :  { %4525 = vmatpush1.bf16.msra.mxu1 %v6514_v59  ;;  %4198 = vmatprep.subr.bf16.mxu0 %v6519_v61  ;;  %v6595_v59 = vld [vmem:[#allocation7 + $0xf60] ss:$16 sps:$4 sm:$0xff]   ;;  %v6598_v61 = vld [vmem:[#allocation7 + $0xf68] ss:$16 sps:$4 sm:$0xff]  }
 0x2bc   :  { %4526 = vmatprep.subr.bf16.mxu1 %v6522_v62  ;;  %v6603_v62 = vld [vmem:[#allocation7 + $0xf84] ss:$16 sps:$4 sm:$0xff]  }
 0x2be   :  { %4199 = vmatpush1.bf16.msra.mxu0 %v6517_v1  ;;  %v6606_v1 = vld [vmem:[#allocation7 + $0xf8c] ss:$16 sps:$4 sm:$0xff]  }
 0x2bf   :  { %4527 = vmatpush1.bf16.msra.mxu1 %v6520_v5  ;;  %4200 = vmatprep.subr.bf16.mxu0 %v6525_v6  ;;  %v6601_v5 = vld [vmem:[#allocation7 + $0xf80] ss:$16 sps:$4 sm:$0xff]   ;;  %v6604_v6 = vld [vmem:[#allocation7 + $0xf88] ss:$16 sps:$4 sm:$0xff]  }
 0x2c0   :  { %4528 = vmatprep.subr.bf16.mxu1 %v6528_v12  ;;  %v6609_v12 = vld [vmem:[#allocation7 + $0xfa4] ss:$16 sps:$4 sm:$0xff]  }
 0x2c2   :  { %4201 = vmatpush1.bf16.msra.mxu0 %v6523_v14  ;;  %v6612_v14 = vld [vmem:[#allocation7 + $0xfac] ss:$16 sps:$4 sm:$0xff]  }
 0x2c3   :  { %4529 = vmatpush1.bf16.msra.mxu1 %v6526_v51  ;;  %4211 = vmatprep.subr.bf16.mxu0 %v6531_v15  ;;  %v6610_v51 = vld [vmem:[#allocation7 + $0xfa8] ss:$16 sps:$4 sm:$0xff]   ;;  %v6615_v15 = vld [vmem:[#allocation7 + $0xfc4] ss:$16 sps:$4 sm:$0xff]  }
 0x2c4   :  { %4539 = vmatprep.subr.bf16.mxu1 %v6534_v45  ;;  %v6618_v45 = vld [vmem:[#allocation7 + $0xfcc] ss:$16 sps:$4 sm:$0xff]  }
 0x2c5   :  { %4203 = vmatmul.mubr.bf16.vlgmr.msra.gmra.mrb[8].mxu0 %v848_v20 }
 0x2c6   :  { %4531 = vmatmul.mubr.bf16.vlgmr.msra.gmra.mrb[24].mxu1 %v848_v20  ;;  %4212 = vmatpush1.bf16.msra.mxu0 %v6529_v16  ;;  %v6616_v16 = vld [vmem:[#allocation7 + $0xfc8] ss:$16 sps:$4 sm:$0xff]   ;;  %v6621_v20 = vld [vmem:[#allocation7 + $0xfe4] ss:$16 sps:$4 sm:$0xff]  }
 0x2c7   :  { %4243 = vmatprep.mubr.bf16.mxu0 %v851_v3  ;;  %4540 = vmatpush1.bf16.msra.mxu1 %v6532_v24  ;;  %v6624_v24 = vld [vmem:[#allocation7 + $0xfec] ss:$16 sps:$4 sm:$0xff]  }
 0x2c8   :  { %4571 = vmatprep.mubr.bf16.mxu1 %v851_v3  ;;  %4213 = vmatprep.subr.bf16.mxu0 %v6537_v2  ;;  %v6619_v2 = vld [vmem:[#allocation7 + $0xfe0] ss:$16 sps:$4 sm:$0xff]   ;;  %v834_v3 = vmax.f32 %v7036_v25, 0.0  ;;  %v6632_v25 = vld [vmem:[#allocation8 + $0x88] sm:$0xff]  }
 0x2c9   :  { %4541 = vmatprep.subr.bf16.mxu1 %v6540_v0  ;;  %v6622_v0 = vld [vmem:[#allocation7 + $0xfe8] ss:$16 sps:$4 sm:$0xff]  }
 0x2ca   :  { %4214 = vmatpush1.bf16.msra.mxu0 %v6535_v33  ;;  %v6625_v33 = vld [vmem:[#allocation8 + $0x40] sm:$0xff]  }
 0x2cb   :  { %4542 = vmatpush1.bf16.msra.mxu1 %v6538_v27  ;;  %4215 = vmatprep.subr.bf16.mxu0 %v6543_v28  ;;  %v6626_v27 = vld [vmem:[#allocation8 + $0xc0] sm:$0xff]  }
 0x2cc   :  { %4543 = vmatprep.subr.bf16.mxu1 %v6546_v29  ;;  %v6627_v28 = vld [vmem:[#allocation8] sm:$0xff]   ;;  %v850_v29 = vpack.c.bf16 %v834_v3, %v834_v3 }
 0x2ce   :  { %4216 = vmatpush1.bf16.msra.mxu0 %v6541_v57  ;;  %v6628_v57 = vld [vmem:[#allocation8 + $0x80] sm:$0xff]  }
 0x2cf   :  { %4544 = vmatpush1.bf16.msra.mxu1 %v6544_v30  ;;  %4217 = vmatprep.subr.bf16.mxu0 %v6549_v7  ;;  %v6629_v30 = vld [vmem:[#allocation8 + $0x48] sm:$0xff]  }
 0x2d0   :  { %4545 = vmatprep.subr.bf16.mxu1 %v6552_v32  ;;  %v6630_v7 = vld [vmem:[#allocation8 + $0xc8] sm:$0xff]  }
 0x2d1   :  { %v6631_v32 = vld [vmem:[#allocation8 + $0x8] sm:$0xff]  }
 0x2d2   :  { %4218 = vmatpush1.bf16.msra.mxu0 %v6547_v21  ;;  %v6633_v21 = vld [vmem:[#allocation8 + $0x50] sm:$0xff]  }
 0x2d3   :  { %4546 = vmatpush1.bf16.msra.mxu1 %v6550_v17  ;;  %4219 = vmatprep.subr.bf16.mxu0 %v6555_v26  ;;  %v6634_v17 = vld [vmem:[#allocation8 + $0xd0] sm:$0xff]  }
 0x2d4   :  { %4547 = vmatprep.subr.bf16.mxu1 %v6558_v34  ;;  %v6635_v26 = vld [vmem:[#allocation8 + $0x10] sm:$0xff]  }
 0x2d5   :  { %v6636_v34 = vld [vmem:[#allocation8 + $0x90] sm:$0xff]  }
 0x2d6   :  { %4220 = vmatpush1.bf16.msra.mxu0 %v6553_v35  ;;  %v6637_v35 = vld [vmem:[#allocation8 + $0x58] sm:$0xff]  }
 0x2d7   :  { %4548 = vmatpush1.bf16.msra.mxu1 %v6556_v36  ;;  %4221 = vmatprep.subr.bf16.mxu0 %v6561_v37  ;;  %v6638_v36 = vld [vmem:[#allocation8 + $0xd8] sm:$0xff]  }
 0x2d8   :  { %4549 = vmatprep.subr.bf16.mxu1 %v6564_v38  ;;  %v6639_v37 = vld [vmem:[#allocation8 + $0x18] sm:$0xff]  }
 0x2d9   :  { %v6640_v38 = vld [vmem:[#allocation8 + $0x98] sm:$0xff]  }
 0x2da   :  { %4222 = vmatpush1.bf16.msra.mxu0 %v6559_v39  ;;  %v6641_v39 = vld [vmem:[#allocation8 + $0x60] sm:$0xff]  }
 0x2db   :  { %4550 = vmatpush1.bf16.msra.mxu1 %v6562_v40  ;;  %4223 = vmatprep.subr.bf16.mxu0 %v6567_v41  ;;  %v6642_v40 = vld [vmem:[#allocation8 + $0xe0] sm:$0xff]  }
 0x2dc   :  { %4551 = vmatprep.subr.bf16.mxu1 %v6570_v42  ;;  %v6643_v41 = vld [vmem:[#allocation8 + $0x20] sm:$0xff]  }
 0x2dd   :  { %v6644_v42 = vld [vmem:[#allocation8 + $0xa0] sm:$0xff]  }
 0x2de   :  { %4224 = vmatpush1.bf16.msra.mxu0 %v6565_v8  ;;  %v6645_v8 = vld [vmem:[#allocation8 + $0x68] sm:$0xff]  }
 0x2df   :  { %4552 = vmatpush1.bf16.msra.mxu1 %v6568_v48  ;;  %4225 = vmatprep.subr.bf16.mxu0 %v6573_v63  ;;  %v6646_v48 = vld [vmem:[#allocation8 + $0xe8] sm:$0xff]  }
 0x2e0   :  { %4553 = vmatprep.subr.bf16.mxu1 %v6576_v53  ;;  %v6647_v63 = vld [vmem:[#allocation8 + $0x28] sm:$0xff]  }
 0x2e1   :  { %v6648_v53 = vld [vmem:[#allocation8 + $0xa8] sm:$0xff]  }
 0x2e2   :  { %4226 = vmatpush1.bf16.msra.mxu0 %v6571_v43  ;;  %v6649_v43 = vld [vmem:[#allocation8 + $0x70] sm:$0xff]  }
 0x2e3   :  { %4554 = vmatpush1.bf16.msra.mxu1 %v6574_v19  ;;  %4227 = vmatprep.subr.bf16.mxu0 %v6579_v44  ;;  %v6650_v19 = vld [vmem:[#allocation8 + $0xf0] sm:$0xff]  }
 0x2e4   :  { %4555 = vmatprep.subr.bf16.mxu1 %v6582_v46  ;;  %v6651_v44 = vld [vmem:[#allocation8 + $0x30] sm:$0xff]  }
 0x2e5   :  { %v6652_v46 = vld [vmem:[#allocation8 + $0xb0] sm:$0xff]  }
 0x2e6   :  { %4228 = vmatpush1.bf16.msra.mxu0 %v6577_v47  ;;  %v6653_v47 = vld [vmem:[#allocation8 + $0x78] sm:$0xff]  }
 0x2e7   :  { %4556 = vmatpush1.bf16.msra.mxu1 %v6580_v49  ;;  %4229 = vmatprep.subr.bf16.mxu0 %v6585_v13  ;;  %v6654_v49 = vld [vmem:[#allocation8 + $0xf8] sm:$0xff]  }
 0x2e8   :  { %4557 = vmatprep.subr.bf16.mxu1 %v6588_v50  ;;  %v6655_v13 = vld [vmem:[#allocation8 + $0x38] sm:$0xff]  }
 0x2e9   :  { %v6656_v50 = vld [vmem:[#allocation8 + $0xb8] sm:$0xff]  }
 0x2ea   :  { %4230 = vmatpush1.bf16.msra.mxu0 %v6583_v11  ;;  %v6820_v11 = vmov 0.0  }
 0x2eb   :  { %4558 = vmatpush1.bf16.msra.mxu1 %v6586_v23  ;;  %4231 = vmatprep.subr.bf16.mxu0 %v6591_v52  ;;  %v93_v23 = vld [vmem:[#allocation10 + $0x20] sm:$0xf]  ;;  %v94_v52 = vld [vmem:[#allocation10 + $0x24] sm:$0xf] }
 0x2ec   :  { %4559 = vmatprep.subr.bf16.mxu1 %v6594_v54  ;;  %v4584_v54 = vrot.slane %v93_v23, %v6949_v9 }
 0x2ee   :  { %4232 = vmatpush1.bf16.msra.mxu0 %v6589_v56  ;;  %v4592_v56 = vrot.slane %v93_v23, %v7000_v18 }
 0x2ef   :  { %4560 = vmatpush1.bf16.msra.mxu1 %v6592_v31  ;;  %4233 = vmatprep.subr.bf16.mxu0 %v6597_v60  ;;  %v4588_v31 = vrot.slane %v93_v23, %v6952_v10  ;;  %v4609_v60 = vrot.slane %v94_v52, %v6949_v9 }
 0x2f0   :  { %4561 = vmatprep.subr.bf16.mxu1 %v6600_v58  ;;  %v4596_v58 = vrot.slane %v93_v23, %v6965_v22 }
 0x2f2   :  { %4234 = vmatpush1.bf16.msra.mxu0 %v6595_v59 }
 0x2f3   :  { %4562 = vmatpush1.bf16.msra.mxu1 %v6598_v61  ;;  %4235 = vmatprep.subr.bf16.mxu0 %v6603_v62  ;;  %v4617_v61 = vrot.slane %v94_v52, %v7000_v18  ;;  %v4613_v62 = vrot.slane %v94_v52, %v6952_v10 }
 0x2f4   :  { %4563 = vmatprep.subr.bf16.mxu1 %v6606_v1 }
 0x2f6   :  { %4236 = vmatpush1.bf16.msra.mxu0 %v6601_v5 }
 0x2f7   :  { %4564 = vmatpush1.bf16.msra.mxu1 %v6604_v6  ;;  %4237 = vmatprep.subr.bf16.mxu0 %v6609_v12  ;;  %v4621_v12 = vrot.slane %v94_v52, %v6965_v22  ;;  %v6657_v22 = vld [vmem:[%s7137_s4] sm:$0xff]  }
 0x2f8   :  { %4565 = vmatprep.subr.bf16.mxu1 %v6612_v14 }
 0x2fa   :  { %4238 = vmatpush1.bf16.msra.mxu0 %v6607_v55 }
 0x2fb   :  { %4566 = vmatpush1.bf16.msra.mxu1 %v6610_v51  ;;  %4239 = vmatprep.subr.bf16.mxu0 %v6615_v15 }
 0x2fc   :  { %4567 = vmatprep.subr.bf16.mxu1 %v6618_v45 }
 0x2fe   :  { %4240 = vmatpush1.bf16.msra.mxu0 %v6613_v4 }
 0x2ff   :  { %4568 = vmatpush1.bf16.msra.mxu1 %v6616_v16  ;;  %4241 = vmatprep.subr.bf16.mxu0 %v6621_v20 }
 0x300   :  { %4569 = vmatprep.subr.bf16.mxu1 %v6624_v24 }
 0x302   :  { %4242 = vmatpush1.bf16.msra.mxu0 %v6619_v2 }
 0x303   :  { %4570 = vmatpush1.bf16.msra.mxu1 %v6622_v0  ;;  %5714 = vmatprep.subr.bf16.mxu0 %v6625_v33 }
 0x304   :  { %5736 = vmatprep.subr.bf16.mxu1 %v6626_v27 }
 0x305   :  { %4244 = vmatmul.mubr.bf16.vlgmr.msra.gmra.mrb[8].mxu0 %v850_v29 }
 0x306   :  { %4572 = vmatmul.mubr.bf16.vlgmr.msra.gmra.mrb[24].mxu1 %v850_v29  ;;  %5715 = vmatpush3.bf16.msra.mxu0 %v6627_v28 }
 0x307   :  { %5737 = vmatpush3.bf16.msra.mxu1 %v6628_v57  ;;  %5716 = vmatprep.subr.bf16.mxu0 %v6629_v30  ;;  %v6658_v30 = vld [vmem:[%s7137_s4 + $0x8] sm:$0xff]  }
 0x308   :  { %5738 = vmatprep.subr.bf16.mxu1 %v6630_v7  ;;  %v6659_v7 = vld [vmem:[%s7137_s4 + $0x10] sm:$0xff]  }
 0x30a   :  { %5717 = vmatpush3.bf16.msra.mxu0 %v6631_v32  ;;  %v6660_v32 = vld [vmem:[%s7137_s4 + $0x18] sm:$0xff]  }
 0x30b   :  { %5739 = vmatpush3.bf16.msra.mxu1 %v6632_v25  ;;  %5718 = vmatprep.subr.bf16.mxu0 %v6633_v21  ;;  %v6661_v25 = vld [vmem:[%s7137_s4 + $0x20] sm:$0xff]   ;;  %v6662_v21 = vld [vmem:[%s7137_s4 + $0x28] sm:$0xff]  }
 0x30c   :  { %5740 = vmatprep.subr.bf16.mxu1 %v6634_v17  ;;  %v6663_v17 = vld [vmem:[%s7137_s4 + $0x30] sm:$0xff]  }
 0x30e   :  { %5719 = vmatpush3.bf16.msra.mxu0 %v6635_v26  ;;  %v6664_v26 = vld [vmem:[%s7137_s4 + $0x38] sm:$0xff]   ;;  %s6822_s4 = smov [#allocation11]  }
 0x30f   :  { %5741 = vmatpush3.bf16.msra.mxu1 %v6636_v34  ;;  %5720 = vmatprep.subr.bf16.mxu0 %v6637_v35  ;;  %s5108_s22 = sshll.u32 %s6822_s4, 4  ;;  %s5109_s22 = int_to_ptr.vmem [resolvable:$true] %s5108_s22 }
 0x310   :  { %5742 = vmatprep.subr.bf16.mxu1 %v6638_v36  ;;  %s6779_s23 = scalar_lea.vmem %s5109_s22, 128  ;;  %p6784_p13 = scmp.lt.s32.totalorder %s5109_s22, %s5109_s22 }
 0x311   :  { %p6780_p12 = scmp.ne.s32.totalorder %s5109_s22, %s6779_s23  ;;  %p6785_p0 = scmp.lt.s32.totalorder %s6779_s23, %s6779_s23 }
 0x312   :  { %5721 = vmatpush3.bf16.msra.mxu0 %v6639_v37 }
 0x313   :  { %5743 = vmatpush3.bf16.msra.mxu1 %v6640_v38  ;;  %5722 = vmatprep.subr.bf16.mxu0 %v6641_v39  ;;  %p6786_p1 = por %p6785_p0, %p6784_p13 }
 0x314   :  { %5744 = vmatprep.subr.bf16.mxu1 %v6642_v40 }
 0x315   :  { %p6787_p2 = pnand %p6786_p1, %p6780_p12 }
 0x316   :  { %5723 = vmatpush3.bf16.msra.mxu0 %v6643_v41 }
 0x317   :  { %5745 = vmatpush3.bf16.msra.mxu1 %v6644_v42  ;;  %5724 = vmatprep.subr.bf16.mxu0 %v6645_v8  ;;  %v5703_v8 = vld [vmem:[#allocation10 + $0x28] ss:$0 sm:$0xff] }
 0x318   :  { %5746 = vmatprep.subr.bf16.mxu1 %v6646_v48 }
 0x31a   :  { %5725 = vmatpush3.bf16.msra.mxu0 %v6647_v63 }
 0x31b   :  { %5747 = vmatpush3.bf16.msra.mxu1 %v6648_v53  ;;  %5726 = vmatprep.subr.bf16.mxu0 %v6649_v43  ;;  %v5704_v53 = vld [vmem:[#allocation10 + $0x29] ss:$0 sm:$0xff] }
 0x31c   :  { %5748 = vmatprep.subr.bf16.mxu1 %v6650_v19 }
 0x31e   :  { %5727 = vmatpush3.bf16.msra.mxu0 %v6651_v44 }
 0x31f   :  { %5749 = vmatpush3.bf16.msra.mxu1 %v6652_v46  ;;  %5728 = vmatprep.subr.bf16.mxu0 %v6653_v47  ;;  %v5705_v47 = vld [vmem:[#allocation10 + $0x2a] ss:$0 sm:$0xff] }
 0x320   :  { %5750 = vmatprep.subr.bf16.mxu1 %v6654_v49 }
 0x322   :  { %5729 = vmatpush3.bf16.msra.mxu0 %v6655_v13 }
 0x323   :  { %5751 = vmatpush3.bf16.msra.mxu1 %v6656_v50  ;;  %5767 = vmatprep.subr.bf16.mxu0 %v6820_v11 }
 0x3d8   :  { %v4245_v59 = vpop.f32.mrb[8].mxu0 }
 0x3d9   :  { %v4601_v1 = vmul.f32 %v4584_v54, %v4245_v59  ;;  %v4573_v5 = vpop.f32.mrb[24].mxu1  ;;  %v4247_v6 = vpop.f32.mrb[9].mxu0 }
 0x3da   :  { %v4603_v14 = vmul.f32 %v4592_v56, %v4573_v5  ;;  %v4602_v55 = vmul.f32 %v4588_v31, %v4247_v6  ;;  %v4575_v51 = vpop.f32.mrb[25].mxu1  ;;  %v4249_v15 = vpop.f32.mrb[10].mxu0 }
 0x3db   :  { %v4626_v45 = vadd.f32 %v4609_v60, %v4601_v1  ;;  %v4604_v4 = vmul.f32 %v4596_v58, %v4575_v51  ;;  %v4577_v16 = vpop.f32.mrb[26].mxu1  ;;  %v4250_v9 = vpop.f32.mrb[11].mxu0 }
 0x3dc   :  { %v4628_v20 = vadd.f32 %v4617_v61, %v4603_v14  ;;  %v4627_v24 = vadd.f32 %v4613_v62, %v4602_v55  ;;  %v4578_v2 = vpop.f32.mrb[27].mxu1 }
 0x3dd   :  { %v4630_v3 = vmax.f32 %v4626_v45, 0.0  ;;  %v4629_v18 = vadd.f32 %v4621_v12, %v4604_v4 }
 0x3de   :  { %v4632_v0 = vmax.f32 %v4628_v20, 0.0  ;;  %v4631_v10 = vmax.f32 %v4627_v24, 0.0 }
 0x3df   :  { %v4633_v33 = vmax.f32 %v4629_v18, 0.0  ;;  %v4634_v28 = vpack.c.bf16 %v4630_v3, %v4630_v3 }
 0x3e0   :  { %v4635_v27 = vpack.c.bf16 %v4631_v10, %v4631_v10  ;;  %v4636_v57 = vpack.c.bf16 %v4632_v0, %v4632_v0 }
 0x3e1   :  { %v4637_v29 = vpack.c.bf16 %v4633_v33, %v4633_v33 }
 0x3e2   :  { %4926 = vmatprep.mubr.bf16.mxu0 %v4635_v27 }
 0x3e3   :  { %4966 = vmatprep.mubr.bf16.mxu1 %v4637_v29  ;;  %4927 = vmatmul.mubr.bf16.vlgmr.msra.gmra.mrb[12].mxu0 %v4634_v28 }
 0x3e4   :  { %4967 = vmatmul.mubr.bf16.vlgmr.msra.gmra.mrb[28].mxu1 %v4636_v57  ;;  %5768 = vmatpush3.bf16.msra.mxu0 %v6657_v22 }
 0x3e5   :  { %5769 = vmatprep.subr.bf16.mxu0 %v6820_v11  ;;  %5783 = vmatprep.mubr.msk.bf16.mxu0 %vm6821_vm1, %v6820_v11 }
 0x3e8   :  { %5770 = vmatpush3.bf16.msra.mxu0 %v6658_v30 }
 0x3e9   :  { %5771 = vmatprep.subr.bf16.mxu0 %v6820_v11 }
 0x3ec   :  { %5772 = vmatpush3.bf16.msra.mxu0 %v6659_v7 }
 0x3ed   :  { %5773 = vmatprep.subr.bf16.mxu0 %v6820_v11 }
 0x3f0   :  { %5774 = vmatpush3.bf16.msra.mxu0 %v6660_v32 }
 0x3f1   :  { %5775 = vmatprep.subr.bf16.mxu0 %v6820_v11 }
 0x3f4   :  { %5776 = vmatpush3.bf16.msra.mxu0 %v6661_v25 }
 0x3f5   :  { %5777 = vmatprep.subr.bf16.mxu0 %v6820_v11 }
 0x3f8   :  { %5778 = vmatpush3.bf16.msra.mxu0 %v6662_v21 }
 0x3f9   :  { %5779 = vmatprep.subr.bf16.mxu0 %v6820_v11 }
 0x3fc   :  { %5780 = vmatpush3.bf16.msra.mxu0 %v6663_v17 }
 0x3fd   :  { %5781 = vmatprep.subr.bf16.mxu0 %v6820_v11 }
 0x400   :  { %5782 = vmatpush3.bf16.msra.mxu0 %v6664_v26 }
 0x4b6   :  { %v5730_v34 = vpop.f32.mrb[12].mxu0 }
 0x4b7   :  { %v5752_v35 = vpop.f32.mrb[28].mxu1  ;;  %v5731_v36 = vpop.f32.mrb[13].mxu0 }
 0x4b8   :  { %v5732_v37 = vadd.f32 %v5731_v36, %v5730_v34  ;;  %v5753_v38 = vpop.f32.mrb[29].mxu1  ;;  %v5733_v39 = vpop.f32.mrb[14].mxu0 }
 0x4b9   :  { %v5754_v40 = vadd.f32 %v5753_v38, %v5752_v35  ;;  %v5755_v41 = vpop.f32.mrb[30].mxu1  ;;  %v5734_v42 = vpop.f32.mrb[15].mxu0 }
 0x4ba   :  { %v5756_v48 = vpop.f32.mrb[31].mxu1 }
 0x4bb   :  { %v4969_v63 = vadd.f32 %v5754_v40, %v5732_v37 }
 0x4bd   :  { %v4980_v43 = vmul.f32 %v5703_v8, %v4969_v63 }
 0x4bf   :  { %v4987_v19 = vadd.f32 %v5704_v53, %v4980_v43 }
 0x4c1   :  { %v4988_v44 = vmax.f32 %v4987_v19, 0.0 }
 0x4c3   :  { %v4989_v46 = vpack.c.bf16 %v4988_v44, %v4988_v44 }
 0x4c5   :  { %5784 = vmatmul.mubr.bf16.vlgmr.msra.gmra.mrb[16].mxu0 %v4989_v46 }
 0x598   :  { %v5094_v49 = vpop.f32.mrb[16].mxu0 }
 0x599   :  { %v5095_v13 = vadd.f32 %v5705_v47, %v5094_v49  ;;  %v5785_v50 = vpop.f32.mrb[17].mxu0 }
 0x59a   :  { %v5097_v11 = vpop.f32.mrb[18].mxu0 }
 0x59b   :  { %v5786_v23 = vpop.f32.mrb[19].mxu0  ;;  %5101 = vst.msk [vmem:[#allocation11] sm:$0xff] %vm5100_vm2, %v5095_v13 }
 0x59c   :  { %6790 = shalt.err (!%p6787_p2)
}
 0x59d   :  { %s6791_s27 = scalar_lea.hbm %s7139_s6, 128 }
 0x59e   :  { %p6792_p3 = scmp.ne.s32.totalorder %s7139_s6, %s6791_s27  ;;  %p6795_p4 = scmp.lt.u32.totalorder %s6791_s27, %s7139_s6 }
 0x5a0   :  { %p6797_p5 = pnand %p6795_p4, %p6792_p3 }
 0x5a2   :  { %6800 = shalt.err (!%p6797_p5)
}
 0x5a3   :  { %5111 = dma.vmem_to_hbm [thread:$0]  %s5109_s22, 128, %s7139_s6, [#allocation4]  }
 0x5a4   :  { %6807 = dma.done.wait [#allocation4], 128  }
 0x5a5   :  { %6808 = vsyncadd [#allocation4], 4294967168 }
 0x5a6   :  { %5115 = vsyncpa [#allocation3], 1 }
 0x5a7   :  { %5116 = vsyncpa [#allocation6], 1 }
 0x5a8   :  { %5117 = vsyncpa [#allocation9], 1 }
 0x5a9   :  { %5118 = vsyncpa [#allocation4], 1 }

</bundles_post_ra>
